<compile_context>
chip_gen: v5e
topology: v5e:2x2
jax: 0.10.0
libtpu: 0.0.40
codegen_flags: <defaults>
</compile_context>

<pallas_src>
import functools
import math

import jax
import jax.numpy as jnp
from jax.experimental import pallas as pl
from jax.experimental.pallas import tpu as pltpu

EPS = 1e-6            # LayerNormalization eps in the reference repo
NEG_BIG = 1e9         # mask fill magnitude
MM_DTYPE = jnp.bfloat16   # MXU operand dtype (f32 accumulation everywhere)


# ----------------------------- in-kernel math helpers -----------------------------

def _layer_norm(x, gamma, beta):
    # Two-pass (subtraction-based) variance: robust to large means.
    mean = jnp.mean(x, axis=-1, keepdims=True)
    c = x - mean
    var = jnp.mean(c * c, axis=-1, keepdims=True)
    return c * jax.lax.rsqrt(var + EPS) * gamma + beta


def _attend_heads(q_s, kv_s, ctx_s, k_off, v_off, bias, num_heads, d_k, scale):
    """Per-head attention core on VMEM scratch refs (2-D ops only).

    q_s holds Q in columns [0, H*dk); kv_s holds K at [k_off, k_off+H*dk) and V at
    [v_off, v_off+H*dk).  Each head's context is stored into ctx_s[:, h*dk:(h+1)*dk],
    so ctx_s[...] is the concat-of-heads used by a single (Lq, D) @ (D, D) output
    projection (one MXU op with K = D).
    """
    for h in range(num_heads):
        lo = h * d_k
        q_h = q_s[:, lo:lo + d_k].astype(MM_DTYPE)                       # (Lq, dk)
        k_h = kv_s[:, k_off + lo:k_off + lo + d_k].astype(MM_DTYPE)      # (Lk, dk)
        v_h = kv_s[:, v_off + lo:v_off + lo + d_k].astype(MM_DTYPE)      # (Lk, dk)

        # Q @ K^T without materializing a transpose: contract the dk axis directly (NT).
        s = jax.lax.dot_general(q_h, k_h, (((1,), (1,)), ((), ())),
                                preferred_element_type=jnp.float32)      # (Lq, Lk) f32
        s = s * scale + bias                                             # additive mask bias

        m = jnp.max(s, axis=-1, keepdims=True)
        e = jnp.exp(s - m)
        den = jnp.sum(e, axis=-1, keepdims=True)
        p = e * pl.reciprocal(den, approx=True)                          # EUP reciprocal

        ctx_s[:, lo:lo + d_k] = jnp.dot(p.astype(MM_DTYPE), v_h,
                                        preferred_element_type=jnp.float32)


# ----------------------------------- fused kernel ----------------------------------

def decoder_layer_kernel(
        x_ref, eo_ref, em_ref, dm_ref,
        ln1_ref, wqkv1_ref, bqkv1_ref, wo1_ref, bo1_ref,
        ln2_ref, wq2_ref, bq2_ref, wkv2_ref, bkv2_ref, wo2_ref, bo2_ref,
        ln3_ref, w1_ref, b1_ref, w2_ref, b2_ref,
        fln_ref,
        out_ref,
        x_s, qkv_s, kv_s, ctx_s,
        *, num_heads, d_k):
    layer = pl.program_id(1)
    num_layers = pl.num_programs(1)
    d_model = x_s.shape[-1]
    scale = 1.0 / math.sqrt(d_k)

    # Load the batch element's activations into the carried scratch on the first layer.
    @pl.when(layer == 0)
    def _():
        x_s[...] = x_ref[0]

    x = x_s[...]                                    # (Ld, D) f32, carried across layers
    eo = eo_ref[0]                                  # (Le, D) f32

    # Additive mask biases (0 = keep, -1e9 = masked); computed once per step, shared by heads.
    dbias = (dm_ref[0] - 1.0) * NEG_BIG             # (Ld, Ld)
    ebias = (em_ref[0] - 1.0) * NEG_BIG             # (1, Le)

    # ---- 1) masked multi-head self-attention (pre-LN, residual; dropout = identity) ----
    ln1 = ln1_ref[0]                                # (2, D): [gamma; beta]
    x1 = _layer_norm(x, ln1[0:1], ln1[1:2])
    qkv = jnp.dot(x1.astype(MM_DTYPE), wqkv1_ref[0],
                  preferred_element_type=jnp.float32) + bqkv1_ref[0]     # (Ld, 3D), one matmul
    qkv_s[...] = qkv
    _attend_heads(qkv_s, qkv_s, ctx_s, d_model, 2 * d_model, dbias,
                  num_heads, d_k, scale)
    x = x + jnp.dot(ctx_s[...].astype(MM_DTYPE), wo1_ref[0],
                    preferred_element_type=jnp.float32) + bo1_ref[0]

    # ---- 2) multi-head cross-attention over the encoder output ----
    ln2 = ln2_ref[0]
    x2 = _layer_norm(x, ln2[0:1], ln2[1:2])
    q2 = jnp.dot(x2.astype(MM_DTYPE), wq2_ref[0],
                 preferred_element_type=jnp.float32) + bq2_ref[0]        # (Ld, D)
    qkv_s[:, 0:d_model] = q2
    kv = jnp.dot(eo.astype(MM_DTYPE), wkv2_ref[0],
                 preferred_element_type=jnp.float32) + bkv2_ref[0]       # (Le, 2D), one matmul
    kv_s[...] = kv
    _attend_heads(qkv_s, kv_s, ctx_s, 0, d_model, ebias, num_heads, d_k, scale)
    x = x + jnp.dot(ctx_s[...].astype(MM_DTYPE), wo2_ref[0],
                    preferred_element_type=jnp.float32) + bo2_ref[0]

    # ---- 3) position-wise feed-forward: Linear -> ReLU -> [dropout=id] -> Linear ----
    ln3 = ln3_ref[0]
    x3 = _layer_norm(x, ln3[0:1], ln3[1:2])
    hmid = jnp.dot(x3.astype(MM_DTYPE), w1_ref[0],
                   preferred_element_type=jnp.float32) + b1_ref[0]
    hmid = jnp.maximum(hmid, 0.0)
    x = x + jnp.dot(hmid.astype(MM_DTYPE), w2_ref[0],
                    preferred_element_type=jnp.float32) + b2_ref[0]

    x_s[...] = x

    # Final LayerNormalization, written only on the last layer step.
    @pl.when(layer == num_layers - 1)
    def _():
        fln = fln_ref[...]
        out_ref[0] = _layer_norm(x, fln[0:1], fln[1:2])


# ------------------------------------- wrapper --------------------------------------

_WEIGHT_ORDER = ('ln1', 'wqkv1', 'bqkv1', 'wo1', 'bo1',
                 'ln2', 'wq2', 'bq2', 'wkv2', 'bkv2', 'wo2', 'bo2',
                 'ln3', 'w1', 'b1', 'w2', 'b2')


def decoder_forward(x, e_output, e_mask, d_mask, packed, *, num_heads, d_k):
    """packed: dict of stacked per-layer weights from pack_decoder_params()."""
    B, Ld, D = x.shape
    Le = e_output.shape[1]
    num_layers = packed['wqkv1'].shape[0]

    def bspec(arr):      # per-batch blocks: (B, ...) -> (1, ...)
        nd = arr.ndim
        return pl.BlockSpec((1,) + arr.shape[1:],
                            lambda b, l, _z=(0,) * (nd - 1): (b,) + _z)

    def lspec(arr):      # per-layer blocks: (num_layers, ...) -> (1, ...)
        nd = arr.ndim
        return pl.BlockSpec((1,) + arr.shape[1:],
                            lambda b, l, _z=(0,) * (nd - 1): (l,) + _z)

    w_ops = [packed[k] for k in _WEIGHT_ORDER]
    in_specs = ([bspec(x), bspec(e_output), bspec(e_mask), bspec(d_mask)]
                + [lspec(w) for w in w_ops]
                + [pl.BlockSpec(packed['fln'].shape, lambda b, l: (0, 0))])

    # Explicit VMEM budget: ~double-buffered per-layer weight slab + per-batch activations
    # + margin, capped with headroom under v7x's 64 MiB per-TensorCore VMEM.
    per_layer_w = sum(int(w.nbytes) for w in w_ops) // num_layers
    act_bytes = (int(x.nbytes) + int(e_output.nbytes)
                 + int(e_mask.nbytes) + int(d_mask.nbytes)) // B
    need = 3 * per_layer_w + 4 * act_bytes + (4 << 20)
    vmem_limit = int(min(max(need, 32 << 20), 48 << 20))

    kern = functools.partial(decoder_layer_kernel, num_heads=num_heads, d_k=d_k)
    return pl.pallas_call(
        kern,
        out_shape=jax.ShapeDtypeStruct((B, Ld, D), jnp.float32),
        grid=(B, num_layers),
        in_specs=in_specs,
        out_specs=pl.BlockSpec((1, Ld, D), lambda b, l: (b, 0, 0)),
        scratch_shapes=[
            pltpu.VMEM((Ld, D), jnp.float32),        # carried activations across layers
            pltpu.VMEM((Ld, 3 * D), jnp.float32),    # fused self-attn QKV / cross-attn Q
            pltpu.VMEM((Le, 2 * D), jnp.float32),    # fused cross-attn KV
            pltpu.VMEM((Ld, D), jnp.float32),        # concat-of-heads context
        ],
        compiler_params=pltpu.CompilerParams(
            dimension_semantics=("parallel", "arbitrary"),
            vmem_limit_bytes=vmem_limit),
    )(x, e_output, e_mask, d_mask, *w_ops, packed['fln'])


# -------------------------- parameters & kernel-layout packing -----------------------

def _init_linear(key, fan_in, fan_out):
    k1, k2 = jax.random.split(key)
    bound = 1.0 / math.sqrt(fan_in)
    w = jax.random.uniform(k1, (fan_in, fan_out), jnp.float32, -bound, bound)
    b = jax.random.uniform(k2, (1, fan_out), jnp.float32, -bound, bound)
    return w, b


def init_decoder_params(key, d_model, d_ff, num_layers):
    """Raw (2-D weight) parameters, matching the PyTorch module layout (x @ W + b)."""
    layer_params = []
    for _ in range(num_layers):
        keys = jax.random.split(key, 11)
        key = keys[0]
        ln1_g = jnp.ones((1, d_model), jnp.float32)
        ln1_b = jnp.zeros((1, d_model), jnp.float32)
        wq1, bq1 = _init_linear(keys[1], d_model, d_model)
        wk1, bk1 = _init_linear(keys[2], d_model, d_model)
        wv1, bv1 = _init_linear(keys[3], d_model, d_model)
        wo1, bo1 = _init_linear(keys[4], d_model, d_model)
        ln2_g = jnp.ones((1, d_model), jnp.float32)
        ln2_b = jnp.zeros((1, d_model), jnp.float32)
        wq2, bq2 = _init_linear(keys[5], d_model, d_model)
        wk2, bk2 = _init_linear(keys[6], d_model, d_model)
        wv2, bv2 = _init_linear(keys[7], d_model, d_model)
        wo2, bo2 = _init_linear(keys[8], d_model, d_model)
        ln3_g = jnp.ones((1, d_model), jnp.float32)
        ln3_b = jnp.zeros((1, d_model), jnp.float32)
        w1, b1 = _init_linear(keys[9], d_model, d_ff)
        w2, b2 = _init_linear(keys[10], d_ff, d_model)
        layer_params.append((
            ln1_g, ln1_b, wq1, bq1, wk1, bk1, wv1, bv1, wo1, bo1,
            ln2_g, ln2_b, wq2, bq2, wk2, bk2, wv2, bv2, wo2, bo2,
            ln3_g, ln3_b, w1, b1, w2, b2,
        ))
    final_gamma = jnp.ones((1, d_model), jnp.float32)
    final_beta = jnp.zeros((1, d_model), jnp.float32)
    return layer_params, final_gamma, final_beta


def pack_decoder_params(layer_params, final_gamma, final_beta, mm_dtype=MM_DTYPE):
    """Pack raw per-layer params into stacked (num_layers, ...) slabs for the kernel:
    Q/K/V fused column-wise (lane-dense projections), matmul weights cast to bf16,
    biases / LayerNorm params kept in f32."""
    (ln1_g, ln1_b, wq1, bq1, wk1, bk1, wv1, bv1, wo1, bo1,
     ln2_g, ln2_b, wq2, bq2, wk2, bk2, wv2, bv2, wo2, bo2,
     ln3_g, ln3_b, w1, b1, w2, b2) = zip(*layer_params)

    def stack(xs, dt=jnp.float32):
        return jnp.stack(list(xs)).astype(dt)

    packed = dict(
        ln1=jnp.stack([jnp.concatenate([g, b], axis=0) for g, b in zip(ln1_g, ln1_b)]),
        wqkv1=stack([jnp.concatenate([a, b, c], axis=1)
                     for a, b, c in zip(wq1, wk1, wv1)], mm_dtype),
        bqkv1=stack([jnp.concatenate([a, b, c], axis=1)
                     for a, b, c in zip(bq1, bk1, bv1)]),
        wo1=stack(wo1, mm_dtype), bo1=stack(bo1),
        ln2=jnp.stack([jnp.concatenate([g, b], axis=0) for g, b in zip(ln2_g, ln2_b)]),
        wq2=stack(wq2, mm_dtype), bq2=stack(bq2),
        wkv2=stack([jnp.concatenate([a, b], axis=1)
                    for a, b in zip(wk2, wv2)], mm_dtype),
        bkv2=stack([jnp.concatenate([a, b], axis=1)
                    for a, b in zip(bk2, bv2)]),
        wo2=stack(wo2, mm_dtype), bo2=stack(bo2),
        ln3=jnp.stack([jnp.concatenate([g, b], axis=0) for g, b in zip(ln3_g, ln3_b)]),
        w1=stack(w1, mm_dtype), b1=stack(b1),
        w2=stack(w2, mm_dtype), b2=stack(b2),
        fln=jnp.concatenate([final_gamma, final_beta], axis=0),
    )
    return packed


# ---------------------------------- pure-JAX reference ------------------------------

def _layer_norm_ref(x, gamma, beta):
    mean = jnp.mean(x, axis=-1, keepdims=True)
    var = jnp.mean((x - mean) ** 2, axis=-1, keepdims=True)
    return (x - mean) * jax.lax.rsqrt(var + EPS) * gamma + beta


def _mha_ref(q_in, kv_in, mask, wq, bq, wk, bk, wv, bv, wo, bo, num_heads, d_k):
    q = q_in @ wq + bq
    k = kv_in @ wk + bk
    v = kv_in @ wv + bv
    scale = 1.0 / math.sqrt(d_k)
    heads = []
    for h in range(num_heads):
        sl = slice(h * d_k, (h + 1) * d_k)
        qh, kh, vh = q[:, sl], k[:, sl], v[:, sl]
        scores = (qh @ kh.T) * scale
        scores = jnp.where(mask == 0.0, jnp.float32(-NEG_BIG), scores)
        attn = jax.nn.softmax(scores, axis=-1)
        heads.append(attn @ vh)
    out = jnp.concatenate(heads, axis=-1)
    return out @ wo + bo


def _layer_fwd_ref(x, eo, emask, dmask, params, num_heads, d_k):
    (ln1_g, ln1_b, wq1, bq1, wk1, bk1, wv1, bv1, wo1, bo1,
     ln2_g, ln2_b, wq2, bq2, wk2, bk2, wv2, bv2, wo2, bo2,
     ln3_g, ln3_b, w1, b1, w2, b2) = params
    x1 = _layer_norm_ref(x, ln1_g, ln1_b)
    x = x + _mha_ref(x1, x1, dmask, wq1, bq1, wk1, bk1, wv1, bv1, wo1, bo1, num_heads, d_k)
    x2 = _layer_norm_ref(x, ln2_g, ln2_b)
    x = x + _mha_ref(x2, eo, emask, wq2, bq2, wk2, bk2, wv2, bv2, wo2, bo2, num_heads, d_k)
    x3 = _layer_norm_ref(x, ln3_g, ln3_b)
    h = jnp.maximum(x3 @ w1 + b1, 0.0)
    return x + (h @ w2 + b2)


def decoder_ref(x, e_output, e_mask, d_mask, layer_params, final_gamma, final_beta,
                num_heads, d_k):
    for params in layer_params:
        fn = functools.partial(_layer_fwd_ref, params=params, num_heads=num_heads, d_k=d_k)
        x = jax.vmap(fn)(x, e_output, e_mask, d_mask)
    return _layer_norm_ref(x, final_gamma, final_beta)


# ----------------------------------------- main -------------------------------------

if __name__ == "__main__":
    # Small shapes consistent with the module: d_model = num_heads * d_k
    B, L_dec, L_enc = 2, 8, 12
    d_model, d_ff, num_heads, num_layers = 32, 64, 4, 2
    d_k = d_model // num_heads
    drop_out_rate = 0.1  # dropout is identity at inference; rate unused in kernel

    key = jax.random.PRNGKey(0)
    kx, keo, kp = jax.random.split(key, 3)

    x = jax.random.normal(kx, (B, L_dec, d_model), jnp.float32)
    e_output = jax.random.normal(keo, (B, L_enc, d_model), jnp.float32)

    # e_mask: encoder padding mask (B, 1, L_enc); last 3 positions of batch 1 are padding
    e_mask = jnp.ones((B, 1, L_enc), jnp.float32)
    e_mask = e_mask.at[1, 0, L_enc - 3:].set(0.0)
    # d_mask: causal (no-peek) mask (B, L_dec, L_dec)
    causal = jnp.tril(jnp.ones((L_dec, L_dec), jnp.float32))
    d_mask = jnp.broadcast_to(causal, (B, L_dec, L_dec))

    raw_layer_params, final_gamma, final_beta = init_decoder_params(kp, d_model, d_ff, num_layers)
    packed = pack_decoder_params(raw_layer_params, final_gamma, final_beta)

    out = decoder_forward(x, e_output, e_mask, d_mask, packed,
                          num_heads=num_heads, d_k=d_k)
    out = jax.block_until_ready(out)

    ref = decoder_ref(x, e_output, e_mask, d_mask, raw_layer_params,
                      final_gamma, final_beta, num_heads, d_k)
    ref = jax.block_until_ready(ref)

    assert out.shape == (B, L_dec, d_model)
    # Tolerance covers bf16 MXU operands + approx-reciprocal softmax (f32 ref).
    err = float(jnp.max(jnp.abs(out - ref)))
    assert jnp.allclose(out, ref, rtol=3e-2, atol=3e-2), f"Pallas decoder mismatch: max|err|={err}"
    print("KERNEL_OK")
</pallas_src>

<mosaic_0001>
module attributes {stable_mosaic.version = 11 : i64} {
  func.func @decoder_layer_kernel(%arg0: i32, %arg1: i32, %arg2: memref<1x8x32xf32, #tpu.memory_space<vmem>>, %arg3: memref<1x12x32xf32, #tpu.memory_space<vmem>>, %arg4: memref<1x1x12xf32, #tpu.memory_space<vmem>>, %arg5: memref<1x8x8xf32, #tpu.memory_space<vmem>>, %arg6: memref<1x2x32xf32, #tpu.memory_space<vmem>>, %arg7: memref<1x32x96xbf16, #tpu.memory_space<vmem>>, %arg8: memref<1x1x96xf32, #tpu.memory_space<vmem>>, %arg9: memref<1x32x32xbf16, #tpu.memory_space<vmem>>, %arg10: memref<1x1x32xf32, #tpu.memory_space<vmem>>, %arg11: memref<1x2x32xf32, #tpu.memory_space<vmem>>, %arg12: memref<1x32x32xbf16, #tpu.memory_space<vmem>>, %arg13: memref<1x1x32xf32, #tpu.memory_space<vmem>>, %arg14: memref<1x32x64xbf16, #tpu.memory_space<vmem>>, %arg15: memref<1x1x64xf32, #tpu.memory_space<vmem>>, %arg16: memref<1x32x32xbf16, #tpu.memory_space<vmem>>, %arg17: memref<1x1x32xf32, #tpu.memory_space<vmem>>, %arg18: memref<1x2x32xf32, #tpu.memory_space<vmem>>, %arg19: memref<1x32x64xbf16, #tpu.memory_space<vmem>>, %arg20: memref<1x1x64xf32, #tpu.memory_space<vmem>>, %arg21: memref<1x64x32xbf16, #tpu.memory_space<vmem>>, %arg22: memref<1x1x32xf32, #tpu.memory_space<vmem>>, %arg23: memref<2x32xf32, #tpu.memory_space<vmem>>, %arg24: memref<1x8x32xf32, #tpu.memory_space<vmem>>, %arg25: memref<8x32xf32, #tpu.memory_space<vmem>>, %arg26: memref<8x96xf32, #tpu.memory_space<vmem>>, %arg27: memref<12x64xf32, #tpu.memory_space<vmem>>, %arg28: memref<8x32xf32, #tpu.memory_space<vmem>>) attributes {dimension_semantics = [#tpu.dimension_semantics<parallel>, #tpu.dimension_semantics<arbitrary>], iteration_bounds = array<i64: 2, 2>, scalar_prefetch = 0 : i64, scratch_operands = 4 : i64, tpu.core_type = #tpu.core_type<tc>, window_params = [{transform_indices = @transform_0, window_bounds = array<i64: 1, 8, 32>}, {transform_indices = @transform_1, window_bounds = array<i64: 1, 12, 32>}, {transform_indices = @transform_2, window_bounds = array<i64: 1, 1, 12>}, {transform_indices = @transform_3, window_bounds = array<i64: 1, 8, 8>}, {transform_indices = @transform_4, window_bounds = array<i64: 1, 2, 32>}, {transform_indices = @transform_5, window_bounds = array<i64: 1, 32, 96>}, {transform_indices = @transform_6, window_bounds = array<i64: 1, 1, 96>}, {transform_indices = @transform_7, window_bounds = array<i64: 1, 32, 32>}, {transform_indices = @transform_8, window_bounds = array<i64: 1, 1, 32>}, {transform_indices = @transform_9, window_bounds = array<i64: 1, 2, 32>}, {transform_indices = @transform_10, window_bounds = array<i64: 1, 32, 32>}, {transform_indices = @transform_11, window_bounds = array<i64: 1, 1, 32>}, {transform_indices = @transform_12, window_bounds = array<i64: 1, 32, 64>}, {transform_indices = @transform_13, window_bounds = array<i64: 1, 1, 64>}, {transform_indices = @transform_14, window_bounds = array<i64: 1, 32, 32>}, {transform_indices = @transform_15, window_bounds = array<i64: 1, 1, 32>}, {transform_indices = @transform_16, window_bounds = array<i64: 1, 2, 32>}, {transform_indices = @transform_17, window_bounds = array<i64: 1, 32, 64>}, {transform_indices = @transform_18, window_bounds = array<i64: 1, 1, 64>}, {transform_indices = @transform_19, window_bounds = array<i64: 1, 64, 32>}, {transform_indices = @transform_20, window_bounds = array<i64: 1, 1, 32>}, {pipeline_mode = #tpu.pipeline_mode<synchronous>, transform_indices = @transform_21, window_bounds = array<i64: 2, 32>}, {transform_indices = @transform_22, window_bounds = array<i64: 1, 8, 32>}]} {
    %c0_i32 = arith.constant 0 : i32
    %0 = arith.cmpi eq, %arg1, %c0_i32 : i32
    %1 = arith.extui %0 : i1 to i32
    %c0_i32_0 = arith.constant 0 : i32
    %2 = arith.cmpi ne, %1, %c0_i32_0 : i32
    scf.if %2 {
      %c0_194 = arith.constant 0 : index
      %c0_195 = arith.constant 0 : index
      %c0_196 = arith.constant 0 : index
      %348 = vector.load %arg2[%c0_194, %c0_195, %c0_196] : memref<1x8x32xf32, #tpu.memory_space<vmem>>, vector<1x8x32xf32>
      %349 = vector.shape_cast %348 : vector<1x8x32xf32> to vector<8x32xf32>
      %c0_197 = arith.constant 0 : index
      %c0_198 = arith.constant 0 : index
      %350 = vector.load %arg25[%c0_197, %c0_198] : memref<8x32xf32, #tpu.memory_space<vmem>>, vector<8x32xf32>
      tpu.vector_store %arg25[%c0_197, %c0_198], %349 {strides = array<i32>} : memref<8x32xf32, #tpu.memory_space<vmem>>, vector<8x32xf32>,
    } else {
    }
    %c0 = arith.constant 0 : index
    %c0_1 = arith.constant 0 : index
    %3 = vector.load %arg25[%c0, %c0_1] : memref<8x32xf32, #tpu.memory_space<vmem>>, vector<8x32xf32>
    %c0_2 = arith.constant 0 : index
    %c0_3 = arith.constant 0 : index
    %c0_4 = arith.constant 0 : index
    %4 = vector.load %arg3[%c0_2, %c0_3, %c0_4] : memref<1x12x32xf32, #tpu.memory_space<vmem>>, vector<1x12x32xf32>
    %5 = vector.shape_cast %4 : vector<1x12x32xf32> to vector<12x32xf32>
    %c0_5 = arith.constant 0 : index
    %c0_6 = arith.constant 0 : index
    %c0_7 = arith.constant 0 : index
    %6 = vector.load %arg5[%c0_5, %c0_6, %c0_7] : memref<1x8x8xf32, #tpu.memory_space<vmem>>, vector<1x8x8xf32>
    %7 = vector.shape_cast %6 : vector<1x8x8xf32> to vector<8x8xf32>
    %cst = arith.constant 1.000000e+00 : f32
    %8 = vector.broadcast %cst : f32 to vector<8x8xf32>
    %9 = arith.subf %7, %8 : vector<8x8xf32>
    %cst_8 = arith.constant 1.000000e+09 : f32
    %10 = vector.broadcast %cst_8 : f32 to vector<8x8xf32>
    %11 = arith.mulf %9, %10 : vector<8x8xf32>
    %c0_9 = arith.constant 0 : index
    %c0_10 = arith.constant 0 : index
    %c0_11 = arith.constant 0 : index
    %12 = vector.load %arg4[%c0_9, %c0_10, %c0_11] : memref<1x1x12xf32, #tpu.memory_space<vmem>>, vector<1x1x12xf32>
    %13 = vector.shape_cast %12 : vector<1x1x12xf32> to vector<1x12xf32>
    %cst_12 = arith.constant 1.000000e+00 : f32
    %14 = vector.broadcast %cst_12 : f32 to vector<1x12xf32>
    %15 = arith.subf %13, %14 : vector<1x12xf32>
    %cst_13 = arith.constant 1.000000e+09 : f32
    %16 = vector.broadcast %cst_13 : f32 to vector<1x12xf32>
    %17 = arith.mulf %15, %16 : vector<1x12xf32>
    %c0_14 = arith.constant 0 : index
    %c0_15 = arith.constant 0 : index
    %c0_16 = arith.constant 0 : index
    %18 = vector.load %arg6[%c0_14, %c0_15, %c0_16] : memref<1x2x32xf32, #tpu.memory_space<vmem>>, vector<1x2x32xf32>
    %19 = vector.shape_cast %18 : vector<1x2x32xf32> to vector<2x32xf32>
    %20 = vector.extract_strided_slice %19 {offsets = [0, 0], sizes = [1, 32], strides = [1, 1]} : vector<2x32xf32> to vector<1x32xf32>
    %21 = vector.extract_strided_slice %19 {offsets = [1, 0], sizes = [1, 32], strides = [1, 1]} : vector<2x32xf32> to vector<1x32xf32>
    %cst_17 = arith.constant dense<0.000000e+00> : vector<8xf32>
    %22 = vector.multi_reduction <add>, %3, %cst_17 [1] : vector<8x32xf32> to vector<8xf32>
    %23 = vector.shape_cast %22 : vector<8xf32> to vector<8x1xf32>
    %cst_18 = arith.constant 3.200000e+01 : f32
    %24 = vector.broadcast %cst_18 : f32 to vector<8x1xf32>
    %25 = arith.divf %23, %24 : vector<8x1xf32>
    %26 = vector.broadcast %25 : vector<8x1xf32> to vector<8x32xf32>
    %27 = arith.subf %3, %26 : vector<8x32xf32>
    %28 = arith.mulf %27, %27 : vector<8x32xf32>
    %cst_19 = arith.constant dense<0.000000e+00> : vector<8xf32>
    %29 = vector.multi_reduction <add>, %28, %cst_19 [1] : vector<8x32xf32> to vector<8xf32>
    %30 = vector.shape_cast %29 : vector<8xf32> to vector<8x1xf32>
    %cst_20 = arith.constant 3.200000e+01 : f32
    %31 = vector.broadcast %cst_20 : f32 to vector<8x1xf32>
    %32 = arith.divf %30, %31 : vector<8x1xf32>
    %cst_21 = arith.constant 9.99999997E-7 : f32
    %33 = vector.broadcast %cst_21 : f32 to vector<8x1xf32>
    %34 = arith.addf %32, %33 : vector<8x1xf32>
    %35 = math.rsqrt %34 : vector<8x1xf32>
    %36 = vector.broadcast %35 : vector<8x1xf32> to vector<8x32xf32>
    %37 = arith.mulf %27, %36 : vector<8x32xf32>
    %38 = vector.broadcast %20 : vector<1x32xf32> to vector<8x32xf32>
    %39 = arith.mulf %37, %38 : vector<8x32xf32>
    %40 = vector.broadcast %21 : vector<1x32xf32> to vector<8x32xf32>
    %41 = arith.addf %39, %40 : vector<8x32xf32>
    %42 = arith.truncf %41 : vector<8x32xf32> to vector<8x32xbf16>
    %c0_22 = arith.constant 0 : index
    %c0_23 = arith.constant 0 : index
    %c0_24 = arith.constant 0 : index
    %43 = vector.load %arg7[%c0_22, %c0_23, %c0_24] : memref<1x32x96xbf16, #tpu.memory_space<vmem>>, vector<1x32x96xbf16>
    %44 = vector.shape_cast %43 : vector<1x32x96xbf16> to vector<32x96xbf16>
    %cst_25 = arith.constant dense<0.000000e+00> : vector<8x96xf32>
    %45 = tpu.matmul %42, %44, %cst_25 {dimension_numbers = #tpu.dot_dimension_numbers<[1], [0], [0], [1], [0, 0, 1, 1], [], []>} : vector<8x32xbf16>, vector<32x96xbf16>, vector<8x96xf32> -> vector<8x96xf32>
    %c0_26 = arith.constant 0 : index
    %c0_27 = arith.constant 0 : index
    %c0_28 = arith.constant 0 : index
    %46 = vector.load %arg8[%c0_26, %c0_27, %c0_28] : memref<1x1x96xf32, #tpu.memory_space<vmem>>, vector<1x1x96xf32>
    %47 = vector.shape_cast %46 : vector<1x1x96xf32> to vector<1x96xf32>
    %48 = vector.broadcast %47 : vector<1x96xf32> to vector<8x96xf32>
    %49 = arith.addf %45, %48 : vector<8x96xf32>
    %c0_29 = arith.constant 0 : index
    %c0_30 = arith.constant 0 : index
    %50 = vector.load %arg26[%c0_29, %c0_30] : memref<8x96xf32, #tpu.memory_space<vmem>>, vector<8x96xf32>
    tpu.vector_store %arg26[%c0_29, %c0_30], %49 {strides = array<i32>} : memref<8x96xf32, #tpu.memory_space<vmem>>, vector<8x96xf32>,
    %c0_31 = arith.constant 0 : index
    %c0_32 = arith.constant 0 : index
    %51 = vector.load %arg26[%c0_31, %c0_32] : memref<8x96xf32, #tpu.memory_space<vmem>>, vector<8x8xf32>
    %52 = arith.truncf %51 : vector<8x8xf32> to vector<8x8xbf16>
    %c0_33 = arith.constant 0 : index
    %c32 = arith.constant 32 : index
    %53 = vector.load %arg26[%c0_33, %c32] : memref<8x96xf32, #tpu.memory_space<vmem>>, vector<8x8xf32>
    %54 = arith.truncf %53 : vector<8x8xf32> to vector<8x8xbf16>
    %c0_34 = arith.constant 0 : index
    %c64 = arith.constant 64 : index
    %55 = vector.load %arg26[%c0_34, %c64] : memref<8x96xf32, #tpu.memory_space<vmem>>, vector<8x8xf32>
    %56 = arith.truncf %55 : vector<8x8xf32> to vector<8x8xbf16>
    %cst_35 = arith.constant dense<0.000000e+00> : vector<8x8xf32>
    %57 = tpu.matmul %52, %54, %cst_35 {dimension_numbers = #tpu.dot_dimension_numbers<[1], [1], [0], [0], [0, 0, 1, 0], [], []>} : vector<8x8xbf16>, vector<8x8xbf16>, vector<8x8xf32> -> vector<8x8xf32>
    %cst_36 = arith.constant 0.353553385 : f32
    %58 = vector.broadcast %cst_36 : f32 to vector<8x8xf32>
    %59 = arith.mulf %57, %58 : vector<8x8xf32>
    %60 = arith.addf %59, %11 : vector<8x8xf32>
    %cst_37 = arith.constant dense<0xFF800000> : vector<8xf32>
    %61 = vector.multi_reduction <maximumf>, %60, %cst_37 [1] : vector<8x8xf32> to vector<8xf32>
    %62 = vector.shape_cast %61 : vector<8xf32> to vector<8x1xf32>
    %63 = vector.broadcast %62 : vector<8x1xf32> to vector<8x8xf32>
    %64 = arith.subf %60, %63 : vector<8x8xf32>
    %65 = math.exp %64 : vector<8x8xf32>
    %cst_38 = arith.constant dense<0.000000e+00> : vector<8xf32>
    %66 = vector.multi_reduction <add>, %65, %cst_38 [1] : vector<8x8xf32> to vector<8xf32>
    %67 = vector.shape_cast %66 : vector<8xf32> to vector<8x1xf32>
    %68 = tpu.reciprocal %67 {approx = true} : vector<8x1xf32> -> vector<8x1xf32>
    %69 = vector.broadcast %68 : vector<8x1xf32> to vector<8x8xf32>
    %70 = arith.mulf %65, %69 : vector<8x8xf32>
    %71 = arith.truncf %70 : vector<8x8xf32> to vector<8x8xbf16>
    %cst_39 = arith.constant dense<0.000000e+00> : vector<8x8xf32>
    %72 = tpu.matmul %71, %56, %cst_39 {dimension_numbers = #tpu.dot_dimension_numbers<[1], [0], [0], [1], [0, 0, 1, 1], [], []>} : vector<8x8xbf16>, vector<8x8xbf16>, vector<8x8xf32> -> vector<8x8xf32>
    %c0_40 = arith.constant 0 : index
    %c0_41 = arith.constant 0 : index
    %73 = vector.load %arg28[%c0_40, %c0_41] : memref<8x32xf32, #tpu.memory_space<vmem>>, vector<8x8xf32>
    tpu.vector_store %arg28[%c0_40, %c0_41], %72 {strides = array<i32>} : memref<8x32xf32, #tpu.memory_space<vmem>>, vector<8x8xf32>,
    %c0_42 = arith.constant 0 : index
    %c8 = arith.constant 8 : index
    %74 = vector.load %arg26[%c0_42, %c8] : memref<8x96xf32, #tpu.memory_space<vmem>>, vector<8x8xf32>
    %75 = arith.truncf %74 : vector<8x8xf32> to vector<8x8xbf16>
    %c0_43 = arith.constant 0 : index
    %c40 = arith.constant 40 : index
    %76 = vector.load %arg26[%c0_43, %c40] : memref<8x96xf32, #tpu.memory_space<vmem>>, vector<8x8xf32>
    %77 = arith.truncf %76 : vector<8x8xf32> to vector<8x8xbf16>
    %c0_44 = arith.constant 0 : index
    %c72 = arith.constant 72 : index
    %78 = vector.load %arg26[%c0_44, %c72] : memref<8x96xf32, #tpu.memory_space<vmem>>, vector<8x8xf32>
    %79 = arith.truncf %78 : vector<8x8xf32> to vector<8x8xbf16>
    %cst_45 = arith.constant dense<0.000000e+00> : vector<8x8xf32>
    %80 = tpu.matmul %75, %77, %cst_45 {dimension_numbers = #tpu.dot_dimension_numbers<[1], [1], [0], [0], [0, 0, 1, 0], [], []>} : vector<8x8xbf16>, vector<8x8xbf16>, vector<8x8xf32> -> vector<8x8xf32>
    %cst_46 = arith.constant 0.353553385 : f32
    %81 = vector.broadcast %cst_46 : f32 to vector<8x8xf32>
    %82 = arith.mulf %80, %81 : vector<8x8xf32>
    %83 = arith.addf %82, %11 : vector<8x8xf32>
    %cst_47 = arith.constant dense<0xFF800000> : vector<8xf32>
    %84 = vector.multi_reduction <maximumf>, %83, %cst_47 [1] : vector<8x8xf32> to vector<8xf32>
    %85 = vector.shape_cast %84 : vector<8xf32> to vector<8x1xf32>
    %86 = vector.broadcast %85 : vector<8x1xf32> to vector<8x8xf32>
    %87 = arith.subf %83, %86 : vector<8x8xf32>
    %88 = math.exp %87 : vector<8x8xf32>
    %cst_48 = arith.constant dense<0.000000e+00> : vector<8xf32>
    %89 = vector.multi_reduction <add>, %88, %cst_48 [1] : vector<8x8xf32> to vector<8xf32>
    %90 = vector.shape_cast %89 : vector<8xf32> to vector<8x1xf32>
    %91 = tpu.reciprocal %90 {approx = true} : vector<8x1xf32> -> vector<8x1xf32>
    %92 = vector.broadcast %91 : vector<8x1xf32> to vector<8x8xf32>
    %93 = arith.mulf %88, %92 : vector<8x8xf32>
    %94 = arith.truncf %93 : vector<8x8xf32> to vector<8x8xbf16>
    %cst_49 = arith.constant dense<0.000000e+00> : vector<8x8xf32>
    %95 = tpu.matmul %94, %79, %cst_49 {dimension_numbers = #tpu.dot_dimension_numbers<[1], [0], [0], [1], [0, 0, 1, 1], [], []>} : vector<8x8xbf16>, vector<8x8xbf16>, vector<8x8xf32> -> vector<8x8xf32>
    %c0_50 = arith.constant 0 : index
    %c8_51 = arith.constant 8 : index
    %96 = vector.load %arg28[%c0_50, %c8_51] : memref<8x32xf32, #tpu.memory_space<vmem>>, vector<8x8xf32>
    tpu.vector_store %arg28[%c0_50, %c8_51], %95 {strides = array<i32>} : memref<8x32xf32, #tpu.memory_space<vmem>>, vector<8x8xf32>,
    %c0_52 = arith.constant 0 : index
    %c16 = arith.constant 16 : index
    %97 = vector.load %arg26[%c0_52, %c16] : memref<8x96xf32, #tpu.memory_space<vmem>>, vector<8x8xf32>
    %98 = arith.truncf %97 : vector<8x8xf32> to vector<8x8xbf16>
    %c0_53 = arith.constant 0 : index
    %c48 = arith.constant 48 : index
    %99 = vector.load %arg26[%c0_53, %c48] : memref<8x96xf32, #tpu.memory_space<vmem>>, vector<8x8xf32>
    %100 = arith.truncf %99 : vector<8x8xf32> to vector<8x8xbf16>
    %c0_54 = arith.constant 0 : index
    %c80 = arith.constant 80 : index
    %101 = vector.load %arg26[%c0_54, %c80] : memref<8x96xf32, #tpu.memory_space<vmem>>, vector<8x8xf32>
    %102 = arith.truncf %101 : vector<8x8xf32> to vector<8x8xbf16>
    %cst_55 = arith.constant dense<0.000000e+00> : vector<8x8xf32>
    %103 = tpu.matmul %98, %100, %cst_55 {dimension_numbers = #tpu.dot_dimension_numbers<[1], [1], [0], [0], [0, 0, 1, 0], [], []>} : vector<8x8xbf16>, vector<8x8xbf16>, vector<8x8xf32> -> vector<8x8xf32>
    %cst_56 = arith.constant 0.353553385 : f32
    %104 = vector.broadcast %cst_56 : f32 to vector<8x8xf32>
    %105 = arith.mulf %103, %104 : vector<8x8xf32>
    %106 = arith.addf %105, %11 : vector<8x8xf32>
    %cst_57 = arith.constant dense<0xFF800000> : vector<8xf32>
    %107 = vector.multi_reduction <maximumf>, %106, %cst_57 [1] : vector<8x8xf32> to vector<8xf32>
    %108 = vector.shape_cast %107 : vector<8xf32> to vector<8x1xf32>
    %109 = vector.broadcast %108 : vector<8x1xf32> to vector<8x8xf32>
    %110 = arith.subf %106, %109 : vector<8x8xf32>
    %111 = math.exp %110 : vector<8x8xf32>
    %cst_58 = arith.constant dense<0.000000e+00> : vector<8xf32>
    %112 = vector.multi_reduction <add>, %111, %cst_58 [1] : vector<8x8xf32> to vector<8xf32>
    %113 = vector.shape_cast %112 : vector<8xf32> to vector<8x1xf32>
    %114 = tpu.reciprocal %113 {approx = true} : vector<8x1xf32> -> vector<8x1xf32>
    %115 = vector.broadcast %114 : vector<8x1xf32> to vector<8x8xf32>
    %116 = arith.mulf %111, %115 : vector<8x8xf32>
    %117 = arith.truncf %116 : vector<8x8xf32> to vector<8x8xbf16>
    %cst_59 = arith.constant dense<0.000000e+00> : vector<8x8xf32>
    %118 = tpu.matmul %117, %102, %cst_59 {dimension_numbers = #tpu.dot_dimension_numbers<[1], [0], [0], [1], [0, 0, 1, 1], [], []>} : vector<8x8xbf16>, vector<8x8xbf16>, vector<8x8xf32> -> vector<8x8xf32>
    %c0_60 = arith.constant 0 : index
    %c16_61 = arith.constant 16 : index
    %119 = vector.load %arg28[%c0_60, %c16_61] : memref<8x32xf32, #tpu.memory_space<vmem>>, vector<8x8xf32>
    tpu.vector_store %arg28[%c0_60, %c16_61], %118 {strides = array<i32>} : memref<8x32xf32, #tpu.memory_space<vmem>>, vector<8x8xf32>,
    %c0_62 = arith.constant 0 : index
    %c24 = arith.constant 24 : index
    %120 = vector.load %arg26[%c0_62, %c24] : memref<8x96xf32, #tpu.memory_space<vmem>>, vector<8x8xf32>
    %121 = arith.truncf %120 : vector<8x8xf32> to vector<8x8xbf16>
    %c0_63 = arith.constant 0 : index
    %c56 = arith.constant 56 : index
    %122 = vector.load %arg26[%c0_63, %c56] : memref<8x96xf32, #tpu.memory_space<vmem>>, vector<8x8xf32>
    %123 = arith.truncf %122 : vector<8x8xf32> to vector<8x8xbf16>
    %c0_64 = arith.constant 0 : index
    %c88 = arith.constant 88 : index
    %124 = vector.load %arg26[%c0_64, %c88] : memref<8x96xf32, #tpu.memory_space<vmem>>, vector<8x8xf32>
    %125 = arith.truncf %124 : vector<8x8xf32> to vector<8x8xbf16>
    %cst_65 = arith.constant dense<0.000000e+00> : vector<8x8xf32>
    %126 = tpu.matmul %121, %123, %cst_65 {dimension_numbers = #tpu.dot_dimension_numbers<[1], [1], [0], [0], [0, 0, 1, 0], [], []>} : vector<8x8xbf16>, vector<8x8xbf16>, vector<8x8xf32> -> vector<8x8xf32>
    %cst_66 = arith.constant 0.353553385 : f32
    %127 = vector.broadcast %cst_66 : f32 to vector<8x8xf32>
    %128 = arith.mulf %126, %127 : vector<8x8xf32>
    %129 = arith.addf %128, %11 : vector<8x8xf32>
    %cst_67 = arith.constant dense<0xFF800000> : vector<8xf32>
    %130 = vector.multi_reduction <maximumf>, %129, %cst_67 [1] : vector<8x8xf32> to vector<8xf32>
    %131 = vector.shape_cast %130 : vector<8xf32> to vector<8x1xf32>
    %132 = vector.broadcast %131 : vector<8x1xf32> to vector<8x8xf32>
    %133 = arith.subf %129, %132 : vector<8x8xf32>
    %134 = math.exp %133 : vector<8x8xf32>
    %cst_68 = arith.constant dense<0.000000e+00> : vector<8xf32>
    %135 = vector.multi_reduction <add>, %134, %cst_68 [1] : vector<8x8xf32> to vector<8xf32>
    %136 = vector.shape_cast %135 : vector<8xf32> to vector<8x1xf32>
    %137 = tpu.reciprocal %136 {approx = true} : vector<8x1xf32> -> vector<8x1xf32>
    %138 = vector.broadcast %137 : vector<8x1xf32> to vector<8x8xf32>
    %139 = arith.mulf %134, %138 : vector<8x8xf32>
    %140 = arith.truncf %139 : vector<8x8xf32> to vector<8x8xbf16>
    %cst_69 = arith.constant dense<0.000000e+00> : vector<8x8xf32>
    %141 = tpu.matmul %140, %125, %cst_69 {dimension_numbers = #tpu.dot_dimension_numbers<[1], [0], [0], [1], [0, 0, 1, 1], [], []>} : vector<8x8xbf16>, vector<8x8xbf16>, vector<8x8xf32> -> vector<8x8xf32>
    %c0_70 = arith.constant 0 : index
    %c24_71 = arith.constant 24 : index
    %142 = vector.load %arg28[%c0_70, %c24_71] : memref<8x32xf32, #tpu.memory_space<vmem>>, vector<8x8xf32>
    tpu.vector_store %arg28[%c0_70, %c24_71], %141 {strides = array<i32>} : memref<8x32xf32, #tpu.memory_space<vmem>>, vector<8x8xf32>,
    %c0_72 = arith.constant 0 : index
    %c0_73 = arith.constant 0 : index
    %143 = vector.load %arg28[%c0_72, %c0_73] : memref<8x32xf32, #tpu.memory_space<vmem>>, vector<8x32xf32>
    %144 = arith.truncf %143 : vector<8x32xf32> to vector<8x32xbf16>
    %c0_74 = arith.constant 0 : index
    %c0_75 = arith.constant 0 : index
    %c0_76 = arith.constant 0 : index
    %145 = vector.load %arg9[%c0_74, %c0_75, %c0_76] : memref<1x32x32xbf16, #tpu.memory_space<vmem>>, vector<1x32x32xbf16>
    %146 = vector.shape_cast %145 : vector<1x32x32xbf16> to vector<32x32xbf16>
    %cst_77 = arith.constant dense<0.000000e+00> : vector<8x32xf32>
    %147 = tpu.matmul %144, %146, %cst_77 {dimension_numbers = #tpu.dot_dimension_numbers<[1], [0], [0], [1], [0, 0, 1, 1], [], []>} : vector<8x32xbf16>, vector<32x32xbf16>, vector<8x32xf32> -> vector<8x32xf32>
    %148 = arith.addf %3, %147 : vector<8x32xf32>
    %c0_78 = arith.constant 0 : index
    %c0_79 = arith.constant 0 : index
    %c0_80 = arith.constant 0 : index
    %149 = vector.load %arg10[%c0_78, %c0_79, %c0_80] : memref<1x1x32xf32, #tpu.memory_space<vmem>>, vector<1x1x32xf32>
    %150 = vector.shape_cast %149 : vector<1x1x32xf32> to vector<1x32xf32>
    %151 = vector.broadcast %150 : vector<1x32xf32> to vector<8x32xf32>
    %152 = arith.addf %148, %151 : vector<8x32xf32>
    %c0_81 = arith.constant 0 : index
    %c0_82 = arith.constant 0 : index
    %c0_83 = arith.constant 0 : index
    %153 = vector.load %arg11[%c0_81, %c0_82, %c0_83] : memref<1x2x32xf32, #tpu.memory_space<vmem>>, vector<1x2x32xf32>
    %154 = vector.shape_cast %153 : vector<1x2x32xf32> to vector<2x32xf32>
    %155 = vector.extract_strided_slice %154 {offsets = [0, 0], sizes = [1, 32], strides = [1, 1]} : vector<2x32xf32> to vector<1x32xf32>
    %156 = vector.extract_strided_slice %154 {offsets = [1, 0], sizes = [1, 32], strides = [1, 1]} : vector<2x32xf32> to vector<1x32xf32>
    %cst_84 = arith.constant dense<0.000000e+00> : vector<8xf32>
    %157 = vector.multi_reduction <add>, %152, %cst_84 [1] : vector<8x32xf32> to vector<8xf32>
    %158 = vector.shape_cast %157 : vector<8xf32> to vector<8x1xf32>
    %cst_85 = arith.constant 3.200000e+01 : f32
    %159 = vector.broadcast %cst_85 : f32 to vector<8x1xf32>
    %160 = arith.divf %158, %159 : vector<8x1xf32>
    %161 = vector.broadcast %160 : vector<8x1xf32> to vector<8x32xf32>
    %162 = arith.subf %152, %161 : vector<8x32xf32>
    %163 = arith.mulf %162, %162 : vector<8x32xf32>
    %cst_86 = arith.constant dense<0.000000e+00> : vector<8xf32>
    %164 = vector.multi_reduction <add>, %163, %cst_86 [1] : vector<8x32xf32> to vector<8xf32>
    %165 = vector.shape_cast %164 : vector<8xf32> to vector<8x1xf32>
    %cst_87 = arith.constant 3.200000e+01 : f32
    %166 = vector.broadcast %cst_87 : f32 to vector<8x1xf32>
    %167 = arith.divf %165, %166 : vector<8x1xf32>
    %cst_88 = arith.constant 9.99999997E-7 : f32
    %168 = vector.broadcast %cst_88 : f32 to vector<8x1xf32>
    %169 = arith.addf %167, %168 : vector<8x1xf32>
    %170 = math.rsqrt %169 : vector<8x1xf32>
    %171 = vector.broadcast %170 : vector<8x1xf32> to vector<8x32xf32>
    %172 = arith.mulf %162, %171 : vector<8x32xf32>
    %173 = vector.broadcast %155 : vector<1x32xf32> to vector<8x32xf32>
    %174 = arith.mulf %172, %173 : vector<8x32xf32>
    %175 = vector.broadcast %156 : vector<1x32xf32> to vector<8x32xf32>
    %176 = arith.addf %174, %175 : vector<8x32xf32>
    %177 = arith.truncf %176 : vector<8x32xf32> to vector<8x32xbf16>
    %c0_89 = arith.constant 0 : index
    %c0_90 = arith.constant 0 : index
    %c0_91 = arith.constant 0 : index
    %178 = vector.load %arg12[%c0_89, %c0_90, %c0_91] : memref<1x32x32xbf16, #tpu.memory_space<vmem>>, vector<1x32x32xbf16>
    %179 = vector.shape_cast %178 : vector<1x32x32xbf16> to vector<32x32xbf16>
    %cst_92 = arith.constant dense<0.000000e+00> : vector<8x32xf32>
    %180 = tpu.matmul %177, %179, %cst_92 {dimension_numbers = #tpu.dot_dimension_numbers<[1], [0], [0], [1], [0, 0, 1, 1], [], []>} : vector<8x32xbf16>, vector<32x32xbf16>, vector<8x32xf32> -> vector<8x32xf32>
    %c0_93 = arith.constant 0 : index
    %c0_94 = arith.constant 0 : index
    %c0_95 = arith.constant 0 : index
    %181 = vector.load %arg13[%c0_93, %c0_94, %c0_95] : memref<1x1x32xf32, #tpu.memory_space<vmem>>, vector<1x1x32xf32>
    %182 = vector.shape_cast %181 : vector<1x1x32xf32> to vector<1x32xf32>
    %183 = vector.broadcast %182 : vector<1x32xf32> to vector<8x32xf32>
    %184 = arith.addf %180, %183 : vector<8x32xf32>
    %c0_96 = arith.constant 0 : index
    %c0_97 = arith.constant 0 : index
    %185 = vector.load %arg26[%c0_96, %c0_97] : memref<8x96xf32, #tpu.memory_space<vmem>>, vector<8x32xf32>
    tpu.vector_store %arg26[%c0_96, %c0_97], %184 {strides = array<i32>} : memref<8x96xf32, #tpu.memory_space<vmem>>, vector<8x32xf32>,
    %186 = arith.truncf %5 : vector<12x32xf32> to vector<12x32xbf16>
    %c0_98 = arith.constant 0 : index
    %c0_99 = arith.constant 0 : index
    %c0_100 = arith.constant 0 : index
    %187 = vector.load %arg14[%c0_98, %c0_99, %c0_100] : memref<1x32x64xbf16, #tpu.memory_space<vmem>>, vector<1x32x64xbf16>
    %188 = vector.shape_cast %187 : vector<1x32x64xbf16> to vector<32x64xbf16>
    %cst_101 = arith.constant dense<0.000000e+00> : vector<12x64xf32>
    %189 = tpu.matmul %186, %188, %cst_101 {dimension_numbers = #tpu.dot_dimension_numbers<[1], [0], [0], [1], [0, 0, 1, 1], [], []>} : vector<12x32xbf16>, vector<32x64xbf16>, vector<12x64xf32> -> vector<12x64xf32>
    %c0_102 = arith.constant 0 : index
    %c0_103 = arith.constant 0 : index
    %c0_104 = arith.constant 0 : index
    %190 = vector.load %arg15[%c0_102, %c0_103, %c0_104] : memref<1x1x64xf32, #tpu.memory_space<vmem>>, vector<1x1x64xf32>
    %191 = vector.shape_cast %190 : vector<1x1x64xf32> to vector<1x64xf32>
    %192 = vector.broadcast %191 : vector<1x64xf32> to vector<12x64xf32>
    %193 = arith.addf %189, %192 : vector<12x64xf32>
    %c0_105 = arith.constant 0 : index
    %c0_106 = arith.constant 0 : index
    %194 = vector.load %arg27[%c0_105, %c0_106] : memref<12x64xf32, #tpu.memory_space<vmem>>, vector<12x64xf32>
    tpu.vector_store %arg27[%c0_105, %c0_106], %193 {strides = array<i32>} : memref<12x64xf32, #tpu.memory_space<vmem>>, vector<12x64xf32>,
    %c0_107 = arith.constant 0 : index
    %c0_108 = arith.constant 0 : index
    %195 = vector.load %arg26[%c0_107, %c0_108] : memref<8x96xf32, #tpu.memory_space<vmem>>, vector<8x8xf32>
    %196 = arith.truncf %195 : vector<8x8xf32> to vector<8x8xbf16>
    %c0_109 = arith.constant 0 : index
    %c0_110 = arith.constant 0 : index
    %197 = vector.load %arg27[%c0_109, %c0_110] : memref<12x64xf32, #tpu.memory_space<vmem>>, vector<12x8xf32>
    %198 = arith.truncf %197 : vector<12x8xf32> to vector<12x8xbf16>
    %c0_111 = arith.constant 0 : index
    %c32_112 = arith.constant 32 : index
    %199 = vector.load %arg27[%c0_111, %c32_112] : memref<12x64xf32, #tpu.memory_space<vmem>>, vector<12x8xf32>
    %200 = arith.truncf %199 : vector<12x8xf32> to vector<12x8xbf16>
    %cst_113 = arith.constant dense<0.000000e+00> : vector<8x12xf32>
    %201 = tpu.matmul %196, %198, %cst_113 {dimension_numbers = #tpu.dot_dimension_numbers<[1], [1], [0], [0], [0, 0, 1, 0], [], []>} : vector<8x8xbf16>, vector<12x8xbf16>, vector<8x12xf32> -> vector<8x12xf32>
    %cst_114 = arith.constant 0.353553385 : f32
    %202 = vector.broadcast %cst_114 : f32 to vector<8x12xf32>
    %203 = arith.mulf %201, %202 : vector<8x12xf32>
    %204 = vector.broadcast %17 : vector<1x12xf32> to vector<8x12xf32>
    %205 = arith.addf %203, %204 : vector<8x12xf32>
    %cst_115 = arith.constant dense<0xFF800000> : vector<8xf32>
    %206 = vector.multi_reduction <maximumf>, %205, %cst_115 [1] : vector<8x12xf32> to vector<8xf32>
    %207 = vector.shape_cast %206 : vector<8xf32> to vector<8x1xf32>
    %208 = vector.broadcast %207 : vector<8x1xf32> to vector<8x12xf32>
    %209 = arith.subf %205, %208 : vector<8x12xf32>
    %210 = math.exp %209 : vector<8x12xf32>
    %cst_116 = arith.constant dense<0.000000e+00> : vector<8xf32>
    %211 = vector.multi_reduction <add>, %210, %cst_116 [1] : vector<8x12xf32> to vector<8xf32>
    %212 = vector.shape_cast %211 : vector<8xf32> to vector<8x1xf32>
    %213 = tpu.reciprocal %212 {approx = true} : vector<8x1xf32> -> vector<8x1xf32>
    %214 = vector.broadcast %213 : vector<8x1xf32> to vector<8x12xf32>
    %215 = arith.mulf %210, %214 : vector<8x12xf32>
    %216 = arith.truncf %215 : vector<8x12xf32> to vector<8x12xbf16>
    %cst_117 = arith.constant dense<0.000000e+00> : vector<8x8xf32>
    %217 = tpu.matmul %216, %200, %cst_117 {dimension_numbers = #tpu.dot_dimension_numbers<[1], [0], [0], [1], [0, 0, 1, 1], [], []>} : vector<8x12xbf16>, vector<12x8xbf16>, vector<8x8xf32> -> vector<8x8xf32>
    %c0_118 = arith.constant 0 : index
    %c0_119 = arith.constant 0 : index
    %218 = vector.load %arg28[%c0_118, %c0_119] : memref<8x32xf32, #tpu.memory_space<vmem>>, vector<8x8xf32>
    tpu.vector_store %arg28[%c0_118, %c0_119], %217 {strides = array<i32>} : memref<8x32xf32, #tpu.memory_space<vmem>>, vector<8x8xf32>,
    %c0_120 = arith.constant 0 : index
    %c8_121 = arith.constant 8 : index
    %219 = vector.load %arg26[%c0_120, %c8_121] : memref<8x96xf32, #tpu.memory_space<vmem>>, vector<8x8xf32>
    %220 = arith.truncf %219 : vector<8x8xf32> to vector<8x8xbf16>
    %c0_122 = arith.constant 0 : index
    %c8_123 = arith.constant 8 : index
    %221 = vector.load %arg27[%c0_122, %c8_123] : memref<12x64xf32, #tpu.memory_space<vmem>>, vector<12x8xf32>
    %222 = arith.truncf %221 : vector<12x8xf32> to vector<12x8xbf16>
    %c0_124 = arith.constant 0 : index
    %c40_125 = arith.constant 40 : index
    %223 = vector.load %arg27[%c0_124, %c40_125] : memref<12x64xf32, #tpu.memory_space<vmem>>, vector<12x8xf32>
    %224 = arith.truncf %223 : vector<12x8xf32> to vector<12x8xbf16>
    %cst_126 = arith.constant dense<0.000000e+00> : vector<8x12xf32>
    %225 = tpu.matmul %220, %222, %cst_126 {dimension_numbers = #tpu.dot_dimension_numbers<[1], [1], [0], [0], [0, 0, 1, 0], [], []>} : vector<8x8xbf16>, vector<12x8xbf16>, vector<8x12xf32> -> vector<8x12xf32>
    %cst_127 = arith.constant 0.353553385 : f32
    %226 = vector.broadcast %cst_127 : f32 to vector<8x12xf32>
    %227 = arith.mulf %225, %226 : vector<8x12xf32>
    %228 = vector.broadcast %17 : vector<1x12xf32> to vector<8x12xf32>
    %229 = arith.addf %227, %228 : vector<8x12xf32>
    %cst_128 = arith.constant dense<0xFF800000> : vector<8xf32>
    %230 = vector.multi_reduction <maximumf>, %229, %cst_128 [1] : vector<8x12xf32> to vector<8xf32>
    %231 = vector.shape_cast %230 : vector<8xf32> to vector<8x1xf32>
    %232 = vector.broadcast %231 : vector<8x1xf32> to vector<8x12xf32>
    %233 = arith.subf %229, %232 : vector<8x12xf32>
    %234 = math.exp %233 : vector<8x12xf32>
    %cst_129 = arith.constant dense<0.000000e+00> : vector<8xf32>
    %235 = vector.multi_reduction <add>, %234, %cst_129 [1] : vector<8x12xf32> to vector<8xf32>
    %236 = vector.shape_cast %235 : vector<8xf32> to vector<8x1xf32>
    %237 = tpu.reciprocal %236 {approx = true} : vector<8x1xf32> -> vector<8x1xf32>
    %238 = vector.broadcast %237 : vector<8x1xf32> to vector<8x12xf32>
    %239 = arith.mulf %234, %238 : vector<8x12xf32>
    %240 = arith.truncf %239 : vector<8x12xf32> to vector<8x12xbf16>
    %cst_130 = arith.constant dense<0.000000e+00> : vector<8x8xf32>
    %241 = tpu.matmul %240, %224, %cst_130 {dimension_numbers = #tpu.dot_dimension_numbers<[1], [0], [0], [1], [0, 0, 1, 1], [], []>} : vector<8x12xbf16>, vector<12x8xbf16>, vector<8x8xf32> -> vector<8x8xf32>
    %c0_131 = arith.constant 0 : index
    %c8_132 = arith.constant 8 : index
    %242 = vector.load %arg28[%c0_131, %c8_132] : memref<8x32xf32, #tpu.memory_space<vmem>>, vector<8x8xf32>
    tpu.vector_store %arg28[%c0_131, %c8_132], %241 {strides = array<i32>} : memref<8x32xf32, #tpu.memory_space<vmem>>, vector<8x8xf32>,
    %c0_133 = arith.constant 0 : index
    %c16_134 = arith.constant 16 : index
    %243 = vector.load %arg26[%c0_133, %c16_134] : memref<8x96xf32, #tpu.memory_space<vmem>>, vector<8x8xf32>
    %244 = arith.truncf %243 : vector<8x8xf32> to vector<8x8xbf16>
    %c0_135 = arith.constant 0 : index
    %c16_136 = arith.constant 16 : index
    %245 = vector.load %arg27[%c0_135, %c16_136] : memref<12x64xf32, #tpu.memory_space<vmem>>, vector<12x8xf32>
    %246 = arith.truncf %245 : vector<12x8xf32> to vector<12x8xbf16>
    %c0_137 = arith.constant 0 : index
    %c48_138 = arith.constant 48 : index
    %247 = vector.load %arg27[%c0_137, %c48_138] : memref<12x64xf32, #tpu.memory_space<vmem>>, vector<12x8xf32>
    %248 = arith.truncf %247 : vector<12x8xf32> to vector<12x8xbf16>
    %cst_139 = arith.constant dense<0.000000e+00> : vector<8x12xf32>
    %249 = tpu.matmul %244, %246, %cst_139 {dimension_numbers = #tpu.dot_dimension_numbers<[1], [1], [0], [0], [0, 0, 1, 0], [], []>} : vector<8x8xbf16>, vector<12x8xbf16>, vector<8x12xf32> -> vector<8x12xf32>
    %cst_140 = arith.constant 0.353553385 : f32
    %250 = vector.broadcast %cst_140 : f32 to vector<8x12xf32>
    %251 = arith.mulf %249, %250 : vector<8x12xf32>
    %252 = vector.broadcast %17 : vector<1x12xf32> to vector<8x12xf32>
    %253 = arith.addf %251, %252 : vector<8x12xf32>
    %cst_141 = arith.constant dense<0xFF800000> : vector<8xf32>
    %254 = vector.multi_reduction <maximumf>, %253, %cst_141 [1] : vector<8x12xf32> to vector<8xf32>
    %255 = vector.shape_cast %254 : vector<8xf32> to vector<8x1xf32>
    %256 = vector.broadcast %255 : vector<8x1xf32> to vector<8x12xf32>
    %257 = arith.subf %253, %256 : vector<8x12xf32>
    %258 = math.exp %257 : vector<8x12xf32>
    %cst_142 = arith.constant dense<0.000000e+00> : vector<8xf32>
    %259 = vector.multi_reduction <add>, %258, %cst_142 [1] : vector<8x12xf32> to vector<8xf32>
    %260 = vector.shape_cast %259 : vector<8xf32> to vector<8x1xf32>
    %261 = tpu.reciprocal %260 {approx = true} : vector<8x1xf32> -> vector<8x1xf32>
    %262 = vector.broadcast %261 : vector<8x1xf32> to vector<8x12xf32>
    %263 = arith.mulf %258, %262 : vector<8x12xf32>
    %264 = arith.truncf %263 : vector<8x12xf32> to vector<8x12xbf16>
    %cst_143 = arith.constant dense<0.000000e+00> : vector<8x8xf32>
    %265 = tpu.matmul %264, %248, %cst_143 {dimension_numbers = #tpu.dot_dimension_numbers<[1], [0], [0], [1], [0, 0, 1, 1], [], []>} : vector<8x12xbf16>, vector<12x8xbf16>, vector<8x8xf32> -> vector<8x8xf32>
    %c0_144 = arith.constant 0 : index
    %c16_145 = arith.constant 16 : index
    %266 = vector.load %arg28[%c0_144, %c16_145] : memref<8x32xf32, #tpu.memory_space<vmem>>, vector<8x8xf32>
    tpu.vector_store %arg28[%c0_144, %c16_145], %265 {strides = array<i32>} : memref<8x32xf32, #tpu.memory_space<vmem>>, vector<8x8xf32>,
    %c0_146 = arith.constant 0 : index
    %c24_147 = arith.constant 24 : index
    %267 = vector.load %arg26[%c0_146, %c24_147] : memref<8x96xf32, #tpu.memory_space<vmem>>, vector<8x8xf32>
    %268 = arith.truncf %267 : vector<8x8xf32> to vector<8x8xbf16>
    %c0_148 = arith.constant 0 : index
    %c24_149 = arith.constant 24 : index
    %269 = vector.load %arg27[%c0_148, %c24_149] : memref<12x64xf32, #tpu.memory_space<vmem>>, vector<12x8xf32>
    %270 = arith.truncf %269 : vector<12x8xf32> to vector<12x8xbf16>
    %c0_150 = arith.constant 0 : index
    %c56_151 = arith.constant 56 : index
    %271 = vector.load %arg27[%c0_150, %c56_151] : memref<12x64xf32, #tpu.memory_space<vmem>>, vector<12x8xf32>
    %272 = arith.truncf %271 : vector<12x8xf32> to vector<12x8xbf16>
    %cst_152 = arith.constant dense<0.000000e+00> : vector<8x12xf32>
    %273 = tpu.matmul %268, %270, %cst_152 {dimension_numbers = #tpu.dot_dimension_numbers<[1], [1], [0], [0], [0, 0, 1, 0], [], []>} : vector<8x8xbf16>, vector<12x8xbf16>, vector<8x12xf32> -> vector<8x12xf32>
    %cst_153 = arith.constant 0.353553385 : f32
    %274 = vector.broadcast %cst_153 : f32 to vector<8x12xf32>
    %275 = arith.mulf %273, %274 : vector<8x12xf32>
    %276 = vector.broadcast %17 : vector<1x12xf32> to vector<8x12xf32>
    %277 = arith.addf %275, %276 : vector<8x12xf32>
    %cst_154 = arith.constant dense<0xFF800000> : vector<8xf32>
    %278 = vector.multi_reduction <maximumf>, %277, %cst_154 [1] : vector<8x12xf32> to vector<8xf32>
    %279 = vector.shape_cast %278 : vector<8xf32> to vector<8x1xf32>
    %280 = vector.broadcast %279 : vector<8x1xf32> to vector<8x12xf32>
    %281 = arith.subf %277, %280 : vector<8x12xf32>
    %282 = math.exp %281 : vector<8x12xf32>
    %cst_155 = arith.constant dense<0.000000e+00> : vector<8xf32>
    %283 = vector.multi_reduction <add>, %282, %cst_155 [1] : vector<8x12xf32> to vector<8xf32>
    %284 = vector.shape_cast %283 : vector<8xf32> to vector<8x1xf32>
    %285 = tpu.reciprocal %284 {approx = true} : vector<8x1xf32> -> vector<8x1xf32>
    %286 = vector.broadcast %285 : vector<8x1xf32> to vector<8x12xf32>
    %287 = arith.mulf %282, %286 : vector<8x12xf32>
    %288 = arith.truncf %287 : vector<8x12xf32> to vector<8x12xbf16>
    %cst_156 = arith.constant dense<0.000000e+00> : vector<8x8xf32>
    %289 = tpu.matmul %288, %272, %cst_156 {dimension_numbers = #tpu.dot_dimension_numbers<[1], [0], [0], [1], [0, 0, 1, 1], [], []>} : vector<8x12xbf16>, vector<12x8xbf16>, vector<8x8xf32> -> vector<8x8xf32>
    %c0_157 = arith.constant 0 : index
    %c24_158 = arith.constant 24 : index
    %290 = vector.load %arg28[%c0_157, %c24_158] : memref<8x32xf32, #tpu.memory_space<vmem>>, vector<8x8xf32>
    tpu.vector_store %arg28[%c0_157, %c24_158], %289 {strides = array<i32>} : memref<8x32xf32, #tpu.memory_space<vmem>>, vector<8x8xf32>,
    %c0_159 = arith.constant 0 : index
    %c0_160 = arith.constant 0 : index
    %291 = vector.load %arg28[%c0_159, %c0_160] : memref<8x32xf32, #tpu.memory_space<vmem>>, vector<8x32xf32>
    %292 = arith.truncf %291 : vector<8x32xf32> to vector<8x32xbf16>
    %c0_161 = arith.constant 0 : index
    %c0_162 = arith.constant 0 : index
    %c0_163 = arith.constant 0 : index
    %293 = vector.load %arg16[%c0_161, %c0_162, %c0_163] : memref<1x32x32xbf16, #tpu.memory_space<vmem>>, vector<1x32x32xbf16>
    %294 = vector.shape_cast %293 : vector<1x32x32xbf16> to vector<32x32xbf16>
    %cst_164 = arith.constant dense<0.000000e+00> : vector<8x32xf32>
    %295 = tpu.matmul %292, %294, %cst_164 {dimension_numbers = #tpu.dot_dimension_numbers<[1], [0], [0], [1], [0, 0, 1, 1], [], []>} : vector<8x32xbf16>, vector<32x32xbf16>, vector<8x32xf32> -> vector<8x32xf32>
    %296 = arith.addf %152, %295 : vector<8x32xf32>
    %c0_165 = arith.constant 0 : index
    %c0_166 = arith.constant 0 : index
    %c0_167 = arith.constant 0 : index
    %297 = vector.load %arg17[%c0_165, %c0_166, %c0_167] : memref<1x1x32xf32, #tpu.memory_space<vmem>>, vector<1x1x32xf32>
    %298 = vector.shape_cast %297 : vector<1x1x32xf32> to vector<1x32xf32>
    %299 = vector.broadcast %298 : vector<1x32xf32> to vector<8x32xf32>
    %300 = arith.addf %296, %299 : vector<8x32xf32>
    %c0_168 = arith.constant 0 : index
    %c0_169 = arith.constant 0 : index
    %c0_170 = arith.constant 0 : index
    %301 = vector.load %arg18[%c0_168, %c0_169, %c0_170] : memref<1x2x32xf32, #tpu.memory_space<vmem>>, vector<1x2x32xf32>
    %302 = vector.shape_cast %301 : vector<1x2x32xf32> to vector<2x32xf32>
    %303 = vector.extract_strided_slice %302 {offsets = [0, 0], sizes = [1, 32], strides = [1, 1]} : vector<2x32xf32> to vector<1x32xf32>
    %304 = vector.extract_strided_slice %302 {offsets = [1, 0], sizes = [1, 32], strides = [1, 1]} : vector<2x32xf32> to vector<1x32xf32>
    %cst_171 = arith.constant dense<0.000000e+00> : vector<8xf32>
    %305 = vector.multi_reduction <add>, %300, %cst_171 [1] : vector<8x32xf32> to vector<8xf32>
    %306 = vector.shape_cast %305 : vector<8xf32> to vector<8x1xf32>
    %cst_172 = arith.constant 3.200000e+01 : f32
    %307 = vector.broadcast %cst_172 : f32 to vector<8x1xf32>
    %308 = arith.divf %306, %307 : vector<8x1xf32>
    %309 = vector.broadcast %308 : vector<8x1xf32> to vector<8x32xf32>
    %310 = arith.subf %300, %309 : vector<8x32xf32>
    %311 = arith.mulf %310, %310 : vector<8x32xf32>
    %cst_173 = arith.constant dense<0.000000e+00> : vector<8xf32>
    %312 = vector.multi_reduction <add>, %311, %cst_173 [1] : vector<8x32xf32> to vector<8xf32>
    %313 = vector.shape_cast %312 : vector<8xf32> to vector<8x1xf32>
    %cst_174 = arith.constant 3.200000e+01 : f32
    %314 = vector.broadcast %cst_174 : f32 to vector<8x1xf32>
    %315 = arith.divf %313, %314 : vector<8x1xf32>
    %cst_175 = arith.constant 9.99999997E-7 : f32
    %316 = vector.broadcast %cst_175 : f32 to vector<8x1xf32>
    %317 = arith.addf %315, %316 : vector<8x1xf32>
    %318 = math.rsqrt %317 : vector<8x1xf32>
    %319 = vector.broadcast %318 : vector<8x1xf32> to vector<8x32xf32>
    %320 = arith.mulf %310, %319 : vector<8x32xf32>
    %321 = vector.broadcast %303 : vector<1x32xf32> to vector<8x32xf32>
    %322 = arith.mulf %320, %321 : vector<8x32xf32>
    %323 = vector.broadcast %304 : vector<1x32xf32> to vector<8x32xf32>
    %324 = arith.addf %322, %323 : vector<8x32xf32>
    %325 = arith.truncf %324 : vector<8x32xf32> to vector<8x32xbf16>
    %c0_176 = arith.constant 0 : index
    %c0_177 = arith.constant 0 : index
    %c0_178 = arith.constant 0 : index
    %326 = vector.load %arg19[%c0_176, %c0_177, %c0_178] : memref<1x32x64xbf16, #tpu.memory_space<vmem>>, vector<1x32x64xbf16>
    %327 = vector.shape_cast %326 : vector<1x32x64xbf16> to vector<32x64xbf16>
    %cst_179 = arith.constant dense<0.000000e+00> : vector<8x64xf32>
    %328 = tpu.matmul %325, %327, %cst_179 {dimension_numbers = #tpu.dot_dimension_numbers<[1], [0], [0], [1], [0, 0, 1, 1], [], []>} : vector<8x32xbf16>, vector<32x64xbf16>, vector<8x64xf32> -> vector<8x64xf32>
    %c0_180 = arith.constant 0 : index
    %c0_181 = arith.constant 0 : index
    %c0_182 = arith.constant 0 : index
    %329 = vector.load %arg20[%c0_180, %c0_181, %c0_182] : memref<1x1x64xf32, #tpu.memory_space<vmem>>, vector<1x1x64xf32>
    %330 = vector.shape_cast %329 : vector<1x1x64xf32> to vector<1x64xf32>
    %331 = vector.broadcast %330 : vector<1x64xf32> to vector<8x64xf32>
    %332 = arith.addf %328, %331 : vector<8x64xf32>
    %cst_183 = arith.constant 0.000000e+00 : f32
    %333 = vector.broadcast %cst_183 : f32 to vector<8x64xf32>
    %334 = arith.maximumf %332, %333 : vector<8x64xf32>
    %335 = arith.truncf %334 : vector<8x64xf32> to vector<8x64xbf16>
    %c0_184 = arith.constant 0 : index
    %c0_185 = arith.constant 0 : index
    %c0_186 = arith.constant 0 : index
    %336 = vector.load %arg21[%c0_184, %c0_185, %c0_186] : memref<1x64x32xbf16, #tpu.memory_space<vmem>>, vector<1x64x32xbf16>
    %337 = vector.shape_cast %336 : vector<1x64x32xbf16> to vector<64x32xbf16>
    %cst_187 = arith.constant dense<0.000000e+00> : vector<8x32xf32>
    %338 = tpu.matmul %335, %337, %cst_187 {dimension_numbers = #tpu.dot_dimension_numbers<[1], [0], [0], [1], [0, 0, 1, 1], [], []>} : vector<8x64xbf16>, vector<64x32xbf16>, vector<8x32xf32> -> vector<8x32xf32>
    %339 = arith.addf %300, %338 : vector<8x32xf32>
    %c0_188 = arith.constant 0 : index
    %c0_189 = arith.constant 0 : index
    %c0_190 = arith.constant 0 : index
    %340 = vector.load %arg22[%c0_188, %c0_189, %c0_190] : memref<1x1x32xf32, #tpu.memory_space<vmem>>, vector<1x1x32xf32>
    %341 = vector.shape_cast %340 : vector<1x1x32xf32> to vector<1x32xf32>
    %342 = vector.broadcast %341 : vector<1x32xf32> to vector<8x32xf32>
    %343 = arith.addf %339, %342 : vector<8x32xf32>
    %c0_191 = arith.constant 0 : index
    %c0_192 = arith.constant 0 : index
    %344 = vector.load %arg25[%c0_191, %c0_192] : memref<8x32xf32, #tpu.memory_space<vmem>>, vector<8x32xf32>
    tpu.vector_store %arg25[%c0_191, %c0_192], %343 {strides = array<i32>} : memref<8x32xf32, #tpu.memory_space<vmem>>, vector<8x32xf32>,
    %c1_i32 = arith.constant 1 : i32
    %345 = arith.cmpi eq, %arg1, %c1_i32 : i32
    %346 = arith.extui %345 : i1 to i32
    %c0_i32_193 = arith.constant 0 : i32
    %347 = arith.cmpi ne, %346, %c0_i32_193 : i32
    scf.if %347 {
      %c0_194 = arith.constant 0 : index
      %c0_195 = arith.constant 0 : index
      %348 = vector.load %arg23[%c0_194, %c0_195] : memref<2x32xf32, #tpu.memory_space<vmem>>, vector<2x32xf32>
      %349 = vector.extract_strided_slice %348 {offsets = [0, 0], sizes = [1, 32], strides = [1, 1]} : vector<2x32xf32> to vector<1x32xf32>
      %350 = vector.extract_strided_slice %348 {offsets = [1, 0], sizes = [1, 32], strides = [1, 1]} : vector<2x32xf32> to vector<1x32xf32>
      %cst_196 = arith.constant dense<0.000000e+00> : vector<8xf32>
      %351 = vector.multi_reduction <add>, %343, %cst_196 [1] : vector<8x32xf32> to vector<8xf32>
      %352 = vector.shape_cast %351 : vector<8xf32> to vector<8x1xf32>
      %cst_197 = arith.constant 3.200000e+01 : f32
      %353 = vector.broadcast %cst_197 : f32 to vector<8x1xf32>
      %354 = arith.divf %352, %353 : vector<8x1xf32>
      %355 = vector.broadcast %354 : vector<8x1xf32> to vector<8x32xf32>
      %356 = arith.subf %343, %355 : vector<8x32xf32>
      %357 = arith.mulf %356, %356 : vector<8x32xf32>
      %cst_198 = arith.constant dense<0.000000e+00> : vector<8xf32>
      %358 = vector.multi_reduction <add>, %357, %cst_198 [1] : vector<8x32xf32> to vector<8xf32>
      %359 = vector.shape_cast %358 : vector<8xf32> to vector<8x1xf32>
      %cst_199 = arith.constant 3.200000e+01 : f32
      %360 = vector.broadcast %cst_199 : f32 to vector<8x1xf32>
      %361 = arith.divf %359, %360 : vector<8x1xf32>
      %cst_200 = arith.constant 9.99999997E-7 : f32
      %362 = vector.broadcast %cst_200 : f32 to vector<8x1xf32>
      %363 = arith.addf %361, %362 : vector<8x1xf32>
      %364 = math.rsqrt %363 : vector<8x1xf32>
      %365 = vector.broadcast %364 : vector<8x1xf32> to vector<8x32xf32>
      %366 = arith.mulf %356, %365 : vector<8x32xf32>
      %367 = vector.broadcast %349 : vector<1x32xf32> to vector<8x32xf32>
      %368 = arith.mulf %366, %367 : vector<8x32xf32>
      %369 = vector.broadcast %350 : vector<1x32xf32> to vector<8x32xf32>
      %370 = arith.addf %368, %369 : vector<8x32xf32>
      %c0_201 = arith.constant 0 : index
      %c0_202 = arith.constant 0 : index
      %c0_203 = arith.constant 0 : index
      %371 = vector.load %arg24[%c0_201, %c0_202, %c0_203] : memref<1x8x32xf32, #tpu.memory_space<vmem>>, vector<1x8x32xf32>
      %372 = vector.shape_cast %371 : vector<1x8x32xf32> to vector<8x32xf32>
      %373 = vector.shape_cast %370 : vector<8x32xf32> to vector<1x8x32xf32>
      tpu.vector_store %arg24[%c0_201, %c0_202, %c0_203], %373 {strides = array<i32>} : memref<1x8x32xf32, #tpu.memory_space<vmem>>, vector<1x8x32xf32>,
    } else {
    }
    return
  }
  func.func @transform_0(%arg0: i32, %arg1: i32) -> (i32, i32, i32) {
    %c0_i32 = arith.constant 0 : i32
    %c0_i32_0 = arith.constant 0 : i32
    %c0_i32_1 = arith.constant 0 : i32
    return %arg0, %c0_i32, %c0_i32_0 : i32, i32, i32
  }
  func.func @transform_1(%arg0: i32, %arg1: i32) -> (i32, i32, i32) {
    %c0_i32 = arith.constant 0 : i32
    %c0_i32_0 = arith.constant 0 : i32
    %c0_i32_1 = arith.constant 0 : i32
    return %arg0, %c0_i32, %c0_i32_0 : i32, i32, i32
  }
  func.func @transform_2(%arg0: i32, %arg1: i32) -> (i32, i32, i32) {
    %c0_i32 = arith.constant 0 : i32
    %c0_i32_0 = arith.constant 0 : i32
    %c0_i32_1 = arith.constant 0 : i32
    return %arg0, %c0_i32, %c0_i32_0 : i32, i32, i32
  }
  func.func @transform_3(%arg0: i32, %arg1: i32) -> (i32, i32, i32) {
    %c0_i32 = arith.constant 0 : i32
    %c0_i32_0 = arith.constant 0 : i32
    %c0_i32_1 = arith.constant 0 : i32
    return %arg0, %c0_i32, %c0_i32_0 : i32, i32, i32
  }
  func.func @transform_4(%arg0: i32, %arg1: i32) -> (i32, i32, i32) {
    %c0_i32 = arith.constant 0 : i32
    %c0_i32_0 = arith.constant 0 : i32
    %c0_i32_1 = arith.constant 0 : i32
    return %arg1, %c0_i32, %c0_i32_0 : i32, i32, i32
  }
  func.func @transform_5(%arg0: i32, %arg1: i32) -> (i32, i32, i32) {
    %c0_i32 = arith.constant 0 : i32
    %c0_i32_0 = arith.constant 0 : i32
    %c0_i32_1 = arith.constant 0 : i32
    return %arg1, %c0_i32, %c0_i32_0 : i32, i32, i32
  }
  func.func @transform_6(%arg0: i32, %arg1: i32) -> (i32, i32, i32) {
    %c0_i32 = arith.constant 0 : i32
    %c0_i32_0 = arith.constant 0 : i32
    %c0_i32_1 = arith.constant 0 : i32
    return %arg1, %c0_i32, %c0_i32_0 : i32, i32, i32
  }
  func.func @transform_7(%arg0: i32, %arg1: i32) -> (i32, i32, i32) {
    %c0_i32 = arith.constant 0 : i32
    %c0_i32_0 = arith.constant 0 : i32
    %c0_i32_1 = arith.constant 0 : i32
    return %arg1, %c0_i32, %c0_i32_0 : i32, i32, i32
  }
  func.func @transform_8(%arg0: i32, %arg1: i32) -> (i32, i32, i32) {
    %c0_i32 = arith.constant 0 : i32
    %c0_i32_0 = arith.constant 0 : i32
    %c0_i32_1 = arith.constant 0 : i32
    return %arg1, %c0_i32, %c0_i32_0 : i32, i32, i32
  }
  func.func @transform_9(%arg0: i32, %arg1: i32) -> (i32, i32, i32) {
    %c0_i32 = arith.constant 0 : i32
    %c0_i32_0 = arith.constant 0 : i32
    %c0_i32_1 = arith.constant 0 : i32
    return %arg1, %c0_i32, %c0_i32_0 : i32, i32, i32
  }
  func.func @transform_10(%arg0: i32, %arg1: i32) -> (i32, i32, i32) {
    %c0_i32 = arith.constant 0 : i32
    %c0_i32_0 = arith.constant 0 : i32
    %c0_i32_1 = arith.constant 0 : i32
    return %arg1, %c0_i32, %c0_i32_0 : i32, i32, i32
  }
  func.func @transform_11(%arg0: i32, %arg1: i32) -> (i32, i32, i32) {
    %c0_i32 = arith.constant 0 : i32
    %c0_i32_0 = arith.constant 0 : i32
    %c0_i32_1 = arith.constant 0 : i32
    return %arg1, %c0_i32, %c0_i32_0 : i32, i32, i32
  }
  func.func @transform_12(%arg0: i32, %arg1: i32) -> (i32, i32, i32) {
    %c0_i32 = arith.constant 0 : i32
    %c0_i32_0 = arith.constant 0 : i32
    %c0_i32_1 = arith.constant 0 : i32
    return %arg1, %c0_i32, %c0_i32_0 : i32, i32, i32
  }
  func.func @transform_13(%arg0: i32, %arg1: i32) -> (i32, i32, i32) {
    %c0_i32 = arith.constant 0 : i32
    %c0_i32_0 = arith.constant 0 : i32
    %c0_i32_1 = arith.constant 0 : i32
    return %arg1, %c0_i32, %c0_i32_0 : i32, i32, i32
  }
  func.func @transform_14(%arg0: i32, %arg1: i32) -> (i32, i32, i32) {
    %c0_i32 = arith.constant 0 : i32
    %c0_i32_0 = arith.constant 0 : i32
    %c0_i32_1 = arith.constant 0 : i32
    return %arg1, %c0_i32, %c0_i32_0 : i32, i32, i32
  }
  func.func @transform_15(%arg0: i32, %arg1: i32) -> (i32, i32, i32) {
    %c0_i32 = arith.constant 0 : i32
    %c0_i32_0 = arith.constant 0 : i32
    %c0_i32_1 = arith.constant 0 : i32
    return %arg1, %c0_i32, %c0_i32_0 : i32, i32, i32
  }
  func.func @transform_16(%arg0: i32, %arg1: i32) -> (i32, i32, i32) {
    %c0_i32 = arith.constant 0 : i32
    %c0_i32_0 = arith.constant 0 : i32
    %c0_i32_1 = arith.constant 0 : i32
    return %arg1, %c0_i32, %c0_i32_0 : i32, i32, i32
  }
  func.func @transform_17(%arg0: i32, %arg1: i32) -> (i32, i32, i32) {
    %c0_i32 = arith.constant 0 : i32
    %c0_i32_0 = arith.constant 0 : i32
    %c0_i32_1 = arith.constant 0 : i32
    return %arg1, %c0_i32, %c0_i32_0 : i32, i32, i32
  }
  func.func @transform_18(%arg0: i32, %arg1: i32) -> (i32, i32, i32) {
    %c0_i32 = arith.constant 0 : i32
    %c0_i32_0 = arith.constant 0 : i32
    %c0_i32_1 = arith.constant 0 : i32
    return %arg1, %c0_i32, %c0_i32_0 : i32, i32, i32
  }
  func.func @transform_19(%arg0: i32, %arg1: i32) -> (i32, i32, i32) {
    %c0_i32 = arith.constant 0 : i32
    %c0_i32_0 = arith.constant 0 : i32
    %c0_i32_1 = arith.constant 0 : i32
    return %arg1, %c0_i32, %c0_i32_0 : i32, i32, i32
  }
  func.func @transform_20(%arg0: i32, %arg1: i32) -> (i32, i32, i32) {
    %c0_i32 = arith.constant 0 : i32
    %c0_i32_0 = arith.constant 0 : i32
    %c0_i32_1 = arith.constant 0 : i32
    return %arg1, %c0_i32, %c0_i32_0 : i32, i32, i32
  }
  func.func @transform_21(%arg0: i32, %arg1: i32) -> (i32, i32) {
    %c0_i32 = arith.constant 0 : i32
    %c0_i32_0 = arith.constant 0 : i32
    %c0_i32_1 = arith.constant 0 : i32
    return %c0_i32, %c0_i32_0 : i32, i32
  }
  func.func @transform_22(%arg0: i32, %arg1: i32) -> (i32, i32, i32) {
    %c0_i32 = arith.constant 0 : i32
    %c0_i32_0 = arith.constant 0 : i32
    %c0_i32_1 = arith.constant 0 : i32
    return %arg0, %c0_i32, %c0_i32_0 : i32, i32, i32
  }
}

</mosaic_0001>

<bundles_post_ra>
// kernel: tpu_custom_call.1
= control target key start
LH: loop header
LB: loop body
LE: loop exit
PB: predicated region body
PF: predicated region fallthrough
CT: control target
= control target key end

     0   :  { %s4247_s0 = inlined_call_operand.hbm [shape: f32[2,8,32], index: 0, kind: input, shape index: {}]   ;;  %s4248_s1 = inlined_call_operand.vmem [shape: f32[2,12,32], index: 1, kind: input, shape index: {}]   ;;  %s4249_s2 = inlined_call_operand.hbm [shape: f32[2,1,12], index: 2, kind: input, shape index: {}]   ;;  %s4250_s3 = inlined_call_operand.hbm [shape: f32[2,8,8], index: 3, kind: input, shape index: {}]   ;;  %s4251_s4 = inlined_call_operand.hbm [shape: f32[2,2,32], index: 4, kind: input, shape index: {}]   ;;  %s4252_s5 = inlined_call_operand.vmem [shape: bf16[2,32,96], index: 5, kind: input, shape index: {}]   ;;  %s4253_s6 = inlined_call_operand.hbm [shape: f32[2,1,96], index: 6, kind: input, shape index: {}]   ;;  %s4254_s7 = inlined_call_operand.vmem [shape: bf16[2,32,32], index: 7, kind: input, shape index: {}]   ;;  %s4255_s8 = inlined_call_operand.hbm [shape: f32[2,1,32], index: 8, kind: input, shape index: {}]   ;;  %s4256_s9 = inlined_call_operand.hbm [shape: f32[2,2,32], index: 9, kind: input, shape index: {}]   ;;  %s4257_s10 = inlined_call_operand.vmem [shape: bf16[2,32,32], index: 10, kind: input, shape index: {}]   ;;  %s4258_s11 = inlined_call_operand.hbm [shape: f32[2,1,32], index: 11, kind: input, shape index: {}]   ;;  %s4259_s12 = inlined_call_operand.vmem [shape: bf16[2,32,64], index: 12, kind: input, shape index: {}]   ;;  %s4260_s13 = inlined_call_operand.hbm [shape: f32[2,1,64], index: 13, kind: input, shape index: {}]   ;;  %s4261_s14 = inlined_call_operand.hbm [shape: bf16[2,32,32], index: 14, kind: input, shape index: {}]   ;;  %s4262_s15 = inlined_call_operand.hbm [shape: f32[2,1,32], index: 15, kind: input, shape index: {}]   ;;  %s4263_s16 = inlined_call_operand.vmem [shape: f32[2,2,32], index: 16, kind: input, shape index: {}]   ;;  %s4264_s17 = inlined_call_operand.hbm [shape: bf16[2,32,64], index: 17, kind: input, shape index: {}]   ;;  %s4265_s18 = inlined_call_operand.vmem [shape: f32[2,1,64], index: 18, kind: input, shape index: {}]   ;;  %s4266_s19 = inlined_call_operand.vmem [shape: bf16[2,64,32], index: 19, kind: input, shape index: {}]   ;;  %s4267_s20 = inlined_call_operand.vmem [shape: f32[2,1,32], index: 20, kind: input, shape index: {}]   ;;  %s4268_s21 = inlined_call_operand.vmem [shape: f32[2,32], index: 21, kind: input, shape index: {}]   ;;  %s4269_s22 = inlined_call_operand.hbm [shape: f32[2,8,32], index: 22, kind: output, shape index: {}]  }
   0x1   :  { %4303 = sst [smem:[#allocation54_spill]] %s4247_s0 }
   0x2   :  { %4304 = sst [smem:[#allocation55_spill]] %s4248_s1 }
   0x3   :  { %4305 = sst [smem:[#allocation56_spill]] %s4249_s2 }
   0x4   :  { %4306 = sst [smem:[#allocation57_spill]] %s4250_s3 }
   0x5   :  { %4307 = sst [smem:[#allocation58_spill]] %s4251_s4 }
   0x6   :  { %4308 = sst [smem:[#allocation59_spill]] %s4252_s5 }
   0x7   :  { %4309 = sst [smem:[#allocation60_spill]] %s4253_s6 }
   0x8   :  { %4310 = sst [smem:[#allocation61_spill]] %s4254_s7 }
   0x9   :  { %4311 = sst [smem:[#allocation62_spill]] %s4255_s8 }
   0xa   :  { %4312 = sst [smem:[#allocation63_spill]] %s4256_s9 }
   0xb   :  { %4313 = sst [smem:[#allocation64_spill]] %s4257_s10 }
   0xc   :  { %4314 = sst [smem:[#allocation65_spill]] %s4258_s11 }
   0xd   :  { %4315 = sst [smem:[#allocation66_spill]] %s4259_s12 }
   0xe   :  { %4316 = sst [smem:[#allocation67_spill]] %s4260_s13 }
   0xf   :  { %4317 = sst [smem:[#allocation68_spill]] %s4261_s14 }
  0x10   :  { %4318 = sst [smem:[#allocation69_spill]] %s4262_s15 }
  0x11   :  { %4319 = sst [smem:[#allocation70_spill]] %s4263_s16 }
  0x12   :  { %4320 = sst [smem:[#allocation71_spill]] %s4264_s17 }
  0x13   :  { %4321 = sst [smem:[#allocation72_spill]] %s4265_s18 }
  0x14   :  { %4322 = sst [smem:[#allocation73_spill]] %s4266_s19 }
  0x15   :  { %4323 = sst [smem:[#allocation74_spill]] %s4267_s20 }
  0x16   :  { %4324 = sst [smem:[#allocation75_spill]] %s4268_s21 }
  0x17   :  { %4325 = sst [smem:[#allocation76_spill]] %s4269_s22 }
  0x18   :  { %27 = vsyncpa [#allocation7], 0 }
  0x19   :  { %29 = vsyncpa [#allocation7 + $0x1], 0 }
  0x1a   :  { %30 = vsyncpa [#allocation10], 0 }
  0x1b   :  { %32 = vsyncpa [#allocation10 + $0x1], 0 }
  0x1c   :  { %33 = vsyncpa [#allocation13], 0 }
  0x1d   :  { %35 = vsyncpa [#allocation13 + $0x1], 0 }
  0x1e   :  { %36 = vsyncpa [#allocation16], 0 }
  0x1f   :  { %38 = vsyncpa [#allocation16 + $0x1], 0 }
  0x20   :  { %39 = vsyncpa [#allocation19], 0 }
  0x21   :  { %41 = vsyncpa [#allocation19 + $0x1], 0 }
  0x22   :  { %42 = vsyncpa [#allocation22], 0 }
  0x23   :  { %44 = vsyncpa [#allocation22 + $0x1], 0 }
  0x24   :  { %45 = vsyncpa [#allocation25], 0 }
  0x25   :  { %47 = vsyncpa [#allocation25 + $0x1], 0 }
  0x26   :  { %48 = vsyncpa [#allocation8], 0 }
  0x27   :  { %50 = vsyncpa [#allocation8 + $0x1], 0  ;;  %s3616_s3 = smov 0   ;;  %s3618_s28 = smov 0  }
  0x28   :  { %s3620_s29 = smov 0   ;;  %s3622_s30 = smov 0  }
  0x29   :  { %s3624_s4 = smov 0   ;;  %s3626_s0 = smov 0  }
  0x2a   :  { %s3628_s23 = smov 0   ;;  %s3630_s1 = smov 0  }
  0x2b   :  { %s3632_s5 = smov 0   ;;  %s3634_s24 = smov 0  }
  0x2c   :  { %s3636_s6 = smov 0  }
  0x2d LB: > { %4326 = sst [smem:[#allocation35_spill]] %s3446_s28  ;;  %s3672_s25 = sadd.s32 4294967295, %s3482_s6   ;;  %s3482_s6 = sphi %s3636_s6, %s56_s6   ;;  %s3478_s24 = sphi %s3634_s24, %s4416_s24   ;;  %s3474_s5 = sphi %s3632_s5, %s4415_s5   ;;  %s3470_s1 = sphi %s3630_s1, %s4414_s1   ;;  %s3466_s23 = sphi %s3628_s23, %s4413_s23   ;;  %s3462_s0 = sphi %s3626_s0, %s4412_s0   ;;  %s3458_s4 = sphi %s3624_s4, %s4411_s4   ;;  %s3454_s30 = sphi %s3622_s30, %s4410_s30   ;;  %s3450_s29 = sphi %s3620_s29, %s4409_s29   ;;  %s3446_s28 = sphi %s3618_s28, %s4408_s28   ;;  %s3442_s3 = sphi %s3616_s3, %s4407_s3  }
  0x2e   : > { %4327 = sst [smem:[#allocation36_spill]] %s3450_s29  ;;  %s2658_s26 = sadd.s32 4294967294, %s3482_s6  }
  0x2f   : > { %4328 = sst [smem:[#allocation37_spill]] %s3454_s30  ;;  %s65_s2 = sadd.s32 1, %s3474_s5 }
  0x30   : > { %4329 = sst [smem:[#allocation38_spill]] %s3458_s4  ;;  %s68_s27 = sadd.s32 1, %s3478_s24 }
  0x31   : > { %4330 = sst [smem:[#allocation39_spill]] %s3462_s0  ;;  %p66_p0 = scmp.ge.s32.totalorder %s65_s2, 2 }
  0x32   : > { %4331 = sst [smem:[#allocation40_spill]] %s3466_s23  ;;  %s75_s22 = sadd.s32 1, %s3462_s0 }
  0x33   : > { %4332 = sst [smem:[#allocation41_spill]] %s3470_s1  ;;  %p82_p1 = scmp.ne.s32.totalorder %s3462_s0, %s3458_s4 }
  0x34   : > { %4333 = sst [smem:[#allocation42_spill]] %s3474_s5  ;;  %p83_p2 = scmp.eq.s32.totalorder %s3482_s6, 0 }
  0x35   : > { %4334 = sst [smem:[#allocation43_spill]] %s3478_s24  ;;  %s4418_s2 = smov (%p66_p0, %s65_s2), 0 }
  0x36   : > { %4335 = sst [smem:[#allocation44_spill]] %s3482_s6  ;;  %s4420_s27 = smov (!%p66_p0, %s68_s27), %s3478_s24 }
  0x37   : > { %4336 = sst [smem:[#allocation45_spill]] %s4418_s2  ;;  %p3689_p3 = por %p83_p2, %p82_p1 }
  0x38   : > { %p4272_p4 = scmp.ne.s32.totalorder %s3458_s4, %s3454_s30  ;;  %p70_p5 = scmp.ge.s32.totalorder %s4420_s27, 2 }
  0x39   : > { %p89_p6 = scmp.eq.s32.totalorder %s3672_s25, 0  ;;  %s176_s20 = ssub.s32 %s3474_s5, %s4418_s2 }
  0x3a   : > { %s179_s19 = sadd.s32 1, %s3450_s29  ;;  %s4422_s27 = smov (%p70_p5, %s4420_s27), 0 }
  0x3b   : > { %4338 = sst [smem:[#allocation46_spill]] %s4422_s27  ;;  %p3706_p7 = por %p89_p6, %p4272_p4 }
  0x3c   : > { %p177_p8 = scmp.eq.s32.totalorder %s176_s20, 0  ;;  %s72_s18 = ssub.s32 %s3478_s24, %s4422_s27 }
  0x3d   : > { %p186_p9 = scmp.ne.s32.totalorder %s3450_s29, %s3446_s28  ;;  %p73_p10 = scmp.eq.s32.totalorder %s72_s18, 0 }
  0x3e   : > { %p192_p11 = scmp.ne.s32.totalorder %s3446_s28, %s3442_s3  ;;  %p653_p0 = scmp.eq.s32.totalorder %s3672_s25, 3 }
  0x3f   : > { %s3717_s12 = scalar_select %p177_p8, %s3450_s29, %s179_s19  }
  0x40   : > { %s3720_s2 = scalar_select %p73_p10, %s3462_s0, %s75_s22  }
  0x41   : > { %4340 = sst [smem:[#allocation47_spill]] %s3717_s12  ;;  %p3724_p12 = por %p186_p9, %p83_p2 }
  0x42   : > { %4341 = sst [smem:[#allocation48_spill]] %s3720_s2  ;;  %p3730_p13 = por %p192_p11, %p89_p6 }
  0x43   : > { %p659_p5 = scmp.eq.s32.totalorder %s2658_s26, 3  ;;  %p3738_p4 = por %p653_p0, %p82_p1 }
  0x44   : > { %s4343_s7 = scalar_select %p3730_p13, 1, 0 }
  0x45   : > { %s4345_s18 = scalar_select %p3738_p4, 1, 0 }
  0x46   : > { %4344 = sst [smem:[#allocation49_spill]] %s4343_s7  ;;  %p4347_p8 = scmp.ne.s32.totalorder %s3458_s4, %s3454_s30 }
  0x47   : > { %4346 = sst [smem:[#allocation50_spill]] %s4345_s18  ;;  %p2660_p2 = scmp.ge.s32.totalorder %s3482_s6, 4 }
  0x48   : > { %p3745_p10 = por %p659_p5, %p4347_p8  ;;  %s3751_s20 = sand.u32 (!%p2660_p2), 1, %s3462_s0  }
  0x49   : > { %678 = sbr.rel (%p2660_p2) target bundleno = 134 (0x86), region = 20  ;;  %s3754_s22 = sand.u32 (!%p2660_p2), 1, %s3482_s6  }
  0x4a   : > { %s4348_s19 = scalar_select %p3745_p10, 1, 0 }
  0x4b   : > { %s4350_s27 = sld [smem:[#allocation56_spill]] (!%p2660_p2)  ;;  %s712_s12 = scalar_lea.vmem (!%p2660_p2), [#allocation9], %s3751_s20 }
  0x4c   : > { %4349 = sst [smem:[#allocation51_spill]] %s4348_s19  ;;  %s719_s19 = sshll.u32 (!%p2660_p2), %s712_s12, 4  ;;  %s720_s19 = int_to_ptr.vmem [resolvable:$true] %s719_s19 }
  0x4d   : > { %s4281_s0 = scalar_lea.sflag (!%p2660_p2), [#allocation10], %s3754_s22  ;;  %s3767_s18 = sand.u32 (!%p2660_p2), 1, %s3450_s29  }
  0x4e   : > { %s4286_s3 = sshll.u32 %s3474_s5, 1  ;;  %s4351_s23 = sld [smem:[#allocation58_spill]] }
  0x4f   : > { %s4352_s8 = sld [smem:[#allocation62_spill]]  ;;  %s800_s26 = scalar_lea.vmem [#allocation15], %s3767_s18 }
  0x50   : > { %s4353_s11 = sld [smem:[#allocation65_spill]]  ;;  %s844_s29 = scalar_lea.vmem [#allocation18], %s3767_s18 }
  0x51   : > { %s715_s2 = scalar_lea.hbm %s4350_s27, %s3478_s24  ;;  %s4285_s27 = sshll.u32 %s3767_s18, 1 }
  0x52   : > { %s717_s30 = sshll.u32 %s715_s2, 4  ;;  %s4354_s14 = sld [smem:[#allocation68_spill]]  ;;  %s718_s30 = int_to_ptr.hbm [resolvable:$true] %s717_s30 }
  0x53   : > { %2816 = dma.hbm_to_vmem [thread:$0]  (%p3689_p3), %s718_s30, 16, %s720_s19, %s4281_s0  }
  0x54   : > { %s753_s2 = scalar_lea.hbm %s4351_s23, %s4286_s3  ;;  %s749_s30 = scalar_lea.vmem [#allocation12], %s4285_s27 }
  0x55   : > { %s755_s1 = sshll.u32 %s753_s2, 4  ;;  %s757_s19 = sshll.u32 %s749_s30, 4  ;;  %s756_s1 = int_to_ptr.hbm [resolvable:$true] %s755_s1  ;;  %s758_s19 = int_to_ptr.vmem [resolvable:$true] %s757_s19 }
  0x56   : > { %s4288_s0 = scalar_lea.sflag [#allocation13], %s3754_s22  ;;  %s803_s12 = scalar_lea.hbm %s4352_s8, %s3474_s5 }
  0x57   : > { %2818 = dma.hbm_to_vmem [thread:$0]  (%p3724_p12), %s756_s1, 32, %s758_s19, %s4288_s0  }
  0x58   : > { %s805_s23 = sshll.u32 %s803_s12, 4  ;;  %s807_s2 = sshll.u32 %s800_s26, 4  ;;  %s806_s23 = int_to_ptr.hbm [resolvable:$true] %s805_s23  ;;  %s808_s2 = int_to_ptr.vmem [resolvable:$true] %s807_s2 }
  0x59   : > { %s4287_s30 = scalar_lea.sflag [#allocation16], %s3754_s22  ;;  %s847_s7 = scalar_lea.hbm %s4353_s11, %s3474_s5 }
  0x5a   : > { %2820 = dma.hbm_to_vmem [thread:$0]  (%p3724_p12), %s806_s23, 16, %s808_s2, %s4287_s30  }
  0x5b   : > { %s851_s27 = sshll.u32 %s844_s29, 4  ;;  %s849_s3 = sshll.u32 %s847_s7, 4  ;;  %s852_s27 = int_to_ptr.vmem [resolvable:$true] %s851_s27  ;;  %s850_s3 = int_to_ptr.hbm [resolvable:$true] %s849_s3 }
  0x5c   : > { %s4291_s12 = scalar_lea.sflag [#allocation19], %s3754_s22  ;;  %s4289_s26 = sshll.u32 %s3767_s18, 4 }
  0x5d   : > { %2822 = dma.hbm_to_vmem [thread:$0]  (%p3724_p12), %s850_s3, 16, %s852_s27, %s4291_s12  }
  0x5e   : > { %s4290_s23 = sshll.u32 %s3474_s5, 4  ;;  %s887_s7 = scalar_lea.vmem [#allocation21], %s4289_s26 }
  0x5f   : > { %s892_s19 = scalar_lea.hbm %s4354_s14, %s4290_s23  ;;  %s895_s29 = sshll.u32 %s887_s7, 4  ;;  %s896_s29 = int_to_ptr.vmem [resolvable:$true] %s895_s29 }
  0x60   : > { %s893_s30 = sshll.u32 %s892_s19, 4  ;;  %s4294_s0 = scalar_lea.sflag [#allocation22], %s3754_s22  ;;  %s894_s30 = int_to_ptr.hbm [resolvable:$true] %s893_s30 }
  0x61   : > { %s4292_s8 = smov 64   ;;  %s4293_s11 = smov 4  }
  0x62   : > { %2824 = dma.hbm_to_vmem [thread:$0]  (%p3724_p12), %s894_s30, 256, %s896_s29, %s4294_s0, %s4292_s8, %s4292_s8, %s4293_s11  }
  0x63   : > { %s2661_s3 = sshll.u32 %s3751_s20, 3  ;;  %s2662_s27 = sshll.u32 %s3478_s24, 3 }
  0x64   : > { %s4355_s19 = sld [smem:[#allocation54_spill]]  ;;  %s686_s26 = scalar_lea.vmem [#allocation6], %s2661_s3 }
  0x65   : > { %s694_s23 = sshll.u32 %s686_s26, 4  ;;  %s683_s14 = scalar_lea.sflag [#allocation7], %s3751_s20  ;;  %s695_s23 = int_to_ptr.vmem [resolvable:$true] %s694_s23 }
  0x66   : > { %s4356_s8 = sld [smem:[#allocation57_spill]]  ;;  %s730_s2 = scalar_lea.vmem [#allocation11], %s2661_s3 }
  0x67   : > { %s738_s1 = sshll.u32 %s730_s2, 4  ;;  %s4357_s26 = scalar_lea.sflag [#allocation10], %s3754_s22  ;;  %s739_s1 = int_to_ptr.vmem [resolvable:$true] %s738_s1 }
  0x68   : > { %s4358_s0 = sld [smem:[#allocation60_spill]]  ;;  %s4362_s29 = sshll.u32 %s3767_s18, 1 }
  0x69   : > { %s4361_s9 = sld [smem:[#allocation63_spill]]  ;;  %s818_s2 = scalar_lea.vmem [#allocation17], %s4362_s29 }
  0x6a   : > { %s690_s7 = scalar_lea.hbm %s4355_s19, %s2662_s27  ;;  %s4364_s13 = sld [smem:[#allocation67_spill]] }
  0x6b   : > { %s692_s12 = sshll.u32 %s690_s7, 4  ;;  %s4366_s15 = sld [smem:[#allocation69_spill]]  ;;  %s693_s12 = int_to_ptr.hbm [resolvable:$true] %s692_s12 }
  0x6c   : > { %2815 = dma.hbm_to_vmem [thread:$0]  (%p3689_p3), %s693_s12, 128, %s695_s23, %s683_s14  }
  0x6d   : > { %s734_s11 = scalar_lea.hbm %s4356_s8, %s2662_s27  ;;  %s775_s12 = scalar_lea.vmem [#allocation14], %s3767_s18 }
  0x6e   : > { %s736_s19 = sshll.u32 %s734_s11, 4  ;;  %s778_s14 = scalar_lea.hbm %s4358_s0, %s3474_s5  ;;  %s737_s19 = int_to_ptr.hbm [resolvable:$true] %s736_s19 }
  0x6f   : > { %2817 = dma.hbm_to_vmem [thread:$0]  (%p3689_p3), %s737_s19, 128, %s739_s1, %s4357_s26  }
  0x70   : > { %s782_s23 = sshll.u32 %s775_s12, 4  ;;  %s780_s30 = sshll.u32 %s778_s14, 4  ;;  %s783_s23 = int_to_ptr.vmem [resolvable:$true] %s782_s23  ;;  %s781_s30 = int_to_ptr.hbm [resolvable:$true] %s780_s30 }
  0x71   : > { %s4359_s8 = scalar_lea.sflag [#allocation13], %s3754_s22  ;;  %s4360_s11 = sshll.u32 %s3474_s5, 1 }
  0x72   : > { %2819 = dma.hbm_to_vmem [thread:$0]  (%p3724_p12), %s781_s30, 16, %s783_s23, %s4359_s8  }
  0x73   : > { %s822_s27 = scalar_lea.hbm %s4361_s9, %s4360_s11  ;;  %s826_s0 = sshll.u32 %s818_s2, 4  ;;  %s827_s0 = int_to_ptr.vmem [resolvable:$true] %s826_s0 }
  0x74   : > { %s824_s1 = sshll.u32 %s822_s27, 4  ;;  %s4363_s19 = scalar_lea.sflag [#allocation16], %s3754_s22  ;;  %s825_s1 = int_to_ptr.hbm [resolvable:$true] %s824_s1 }
  0x75   : > { %2821 = dma.hbm_to_vmem [thread:$0]  (%p3724_p12), %s825_s1, 32, %s827_s0, %s4363_s19  }
  0x76   : > { %s872_s7 = scalar_lea.hbm %s4364_s13, %s3474_s5  ;;  %s869_s14 = scalar_lea.vmem [#allocation20], %s3767_s18 }
  0x77   : > { %s876_s12 = sshll.u32 %s869_s14, 4  ;;  %s874_s23 = sshll.u32 %s872_s7, 4  ;;  %s877_s12 = int_to_ptr.vmem [resolvable:$true] %s876_s12  ;;  %s875_s23 = int_to_ptr.hbm [resolvable:$true] %s874_s23 }
  0x78   : > { %s4365_s30 = scalar_lea.sflag [#allocation19], %s3754_s22  ;;  %s911_s21 = scalar_lea.hbm %s4366_s15, %s3474_s5 }
  0x79   : > { %2823 = dma.hbm_to_vmem [thread:$0]  (%p3724_p12), %s875_s23, 16, %s877_s12, %s4365_s30  }
  0x7a   : > { %s908_s3 = scalar_lea.vmem [#allocation23], %s3767_s18  ;;  %s913_s29 = sshll.u32 %s911_s21, 4  ;;  %s914_s29 = int_to_ptr.hbm [resolvable:$true] %s913_s29 }
  0x7b   : > { %s915_s27 = sshll.u32 %s908_s3, 4  ;;  %s4367_s2 = scalar_lea.sflag [#allocation22], %s3754_s22  ;;  %s916_s27 = int_to_ptr.vmem [resolvable:$true] %s915_s27 }
  0x7c   : > { %2825 = dma.hbm_to_vmem [thread:$0]  (%p3724_p12), %s914_s29, 16, %s916_s27, %s4367_s2  }
  0x7d   : > { %s4368_s0 = sshll.u32 %s3474_s5, 4  ;;  %s4369_s17 = sld [smem:[#allocation71_spill]] }
  0x7e   : > { %s4370_s7 = sshll.u32 %s3767_s18, 4  ;;  %s930_s23 = scalar_lea.sflag [#allocation25], %s3767_s18 }
  0x7f   : > { %s933_s14 = scalar_lea.vmem [#allocation24], %s4370_s7  ;;  %s4371_s30 = smov 4  }
  0x80   : > { %s941_s12 = sshll.u32 %s933_s14, 4  ;;  %s4372_s8 = smov 64   ;;  %s942_s12 = int_to_ptr.vmem [resolvable:$true] %s941_s12 }
  0x83   : > { %s938_s26 = scalar_lea.hbm %s4369_s17, %s4368_s0 }
  0x84   : > { %s939_s20 = sshll.u32 %s938_s26, 4  ;;  %s940_s20 = int_to_ptr.hbm [resolvable:$true] %s939_s20 }
  0x85   : > { %2826 = dma.hbm_to_vmem [thread:$0]  (%p3724_p12), %s940_s20, 256, %s942_s12, %s930_s23, %s4372_s8, %s4372_s8, %s4371_s30  }
  0x86 PF: > { %p2675_p1 = scmp.ge.s32.totalorder %s3482_s6, 1  ;;  %p969_p3 = scmp.lt.s32.totalorder %s3482_s6, 5 }
  0x88   : > { %p970_p6 = pnand %p2675_p1, %p969_p3 }
  0x8a   : > { %973 = sbr.rel (%p970_p6) target bundleno = 3680 (0xe60), region = 108 }
  0x8f   : > { %s3889_s22 = sand.u32 1, %s3458_s4  }
  0x90   : > { %s3892_s11 = sshll.u32 %s3889_s22, 3  ;;  %s976_s10 = scalar_lea.sflag [#allocation7], %s3889_s22 }
  0x91   : > { %3409 = dma.done.wait (%p3706_p7), %s976_s10, 128  }
  0x92   : > { %3411 = vsyncadd (%p3706_p7), %s976_s10, 4294967168  ;;  %s985_s21 = sand.u32 1, %s3672_s25  }
  0x93   : > { %s986_s3 = scalar_lea.sflag [#allocation10], %s985_s21 }
  0x94   : > { %3413 = dma.done.wait (%p3706_p7), %s986_s3, 144  }
  0x95   : > { %3415 = vsyncadd (%p3706_p7), %s986_s3, 4294967152  ;;  %s3907_s2 = sand.u32 1, %s3446_s28   ;;  %s1005_s19 = scalar_lea.sflag [#allocation13], %s985_s21 }
  0x96   : > { %s2678_s0 = sshll.u32 %s3907_s2, 1 }
  0x97   : > { %s3911_s26 = scalar_lea.vmem [#allocation12], %s2678_s0 }
  0x98   : > { %3417 = dma.done.wait (%p3730_p13), %s1005_s19, 48  }
  0x99   : > { %3419 = vsyncadd (%p3730_p13), %s1005_s19, 4294967248  ;;  %s1024_s25 = scalar_lea.sflag [#allocation16], %s985_s21 }
  0x9a   : > { %3421 = dma.done.wait (%p3730_p13), %s1024_s25, 48  }
  0x9b   : > { %3423 = vsyncadd (%p3730_p13), %s1024_s25, 4294967248  ;;  %s3923_s7 = scalar_lea.vmem [#allocation17], %s2678_s0  ;;  %s1043_s14 = scalar_lea.sflag [#allocation19], %s985_s21 }
  0x9c   : > { %3425 = dma.done.wait (%p3730_p13), %s1043_s14, 32  }
  0x9d   : > { %3427 = vsyncadd (%p3730_p13), %s1043_s14, 4294967264  ;;  %s2680_s23 = sshll.u32 %s3907_s2, 4  ;;  %s1061_s8 = scalar_lea.sflag [#allocation22], %s985_s21 }
  0x9e   : > { %s3932_s10 = scalar_lea.vmem [#allocation21], %s2680_s23 }
  0x9f   : > { %4374 = sst [smem:[#allocation52_spill]] %s3932_s10 }
  0xa0   : > { %3429 = dma.done.wait (%p3730_p13), %s1061_s8, 272  }
  0xa1   : > { %3431 = vsyncadd (%p3730_p13), %s1061_s8, 4294967024  ;;  %s1080_s0 = scalar_lea.sflag [#allocation25], %s3907_s2  ;;  %s3940_s19 = scalar_lea.vmem [#allocation24], %s2680_s23 }
  0xa2   : > { %4375 = sst [smem:[#allocation53_spill]] %s3940_s19 }
  0xa3   : > { %3433 = dma.done.wait (%p3730_p13), %s1080_s0, 256  }
  0xa4   : > { %3435 = vsyncadd (%p3730_p13), %s1080_s0, 4294967040  ;;  %s4376_s21 = sld [smem:[#allocation41_spill]] }
  0xa5   : > { %s4377_s25 = sld [smem:[#allocation40_spill]] }
  0xa6   : > { %s4378_s29 = sld [smem:[#allocation55_spill]] }
  0xa7   : > { %s4379_s20 = sld [smem:[#allocation59_spill]] }
  0xa8   : > { %s4380_s9 = sld [smem:[#allocation61_spill]] }
  0xa9   : > { %s4381_s24 = sld [smem:[#allocation64_spill]] }
  0xaa   : > { %p1234_p7 = scmp.lt.s32.totalorder %s4376_s21, 1  ;;  %s4384_s18 = sld [smem:[#allocation70_spill]] }
  0xab   : > { %p1239_p9 = scmp.lt.s32.totalorder %s4377_s25, 1  ;;  %s4385_s17 = sld [smem:[#allocation73_spill]] }
  0xac   : > { %s4424_s21 = smov (!%p1234_p7, %s4376_s21), 1  ;;  %p2696_p11 = scmp.ne.s32.totalorder %s4377_s25, 0 }
  0xad   : > { %s3950_s14 = scalar_select %p1239_p9, %s4377_s25, 1 }
  0xae   : > { %s2793_s23 = sshll.u32 %s4424_s21, 4  ;;  %s4387_s4 = scalar_lea.vmem (!%p2696_p11), [#allocation6], %s3892_s11 }
  0xaf   : > { %s3955_s0 = scalar_lea.vmem %s4378_s29, %s2793_s23  ;;  %s2794_s27 = sshll.u32 %s3950_s14, 4 }
  0xb0   : > { %s3961_s1 = scalar_lea.vmem %s4379_s20, %s2794_s27  ;;  %s3966_s13 = scalar_lea.vmem %s4380_s9, %s2794_s27 }
  0xb1   : > { %s3971_s21 = scalar_lea.vmem %s4381_s24, %s2794_s27  ;;  %s4382_s23 = sld [smem:[#allocation66_spill]] }
  0xb2   : > { %s2693_s29 = sshll.u32 %s3950_s14, 1  ;;  %s4383_s20 = sld [smem:[#allocation72_spill]] }
  0xb3   : > { %s3986_s9 = scalar_lea.vmem %s4384_s18, %s2693_s29  ;;  %s2798_s16 = sshll.u32 %s3950_s14, 5 }
  0xb4   : > { %s3992_s24 = scalar_lea.vmem %s4385_s17, %s2798_s16 }
  0xb7   : > { %s3976_s8 = scalar_lea.vmem %s4382_s23, %s2794_s27  ;;  %s4386_s27 = sld [smem:[#allocation74_spill]] }
  0xb8   : > { %s1265_s30 = scalar_lea.vmem %s4383_s20, %s3950_s14  ;;  %s1233_s23 = scalar_lea.vmem [#allocation26], %s3892_s11 }
  0xb9   : > { %1278 = sbr.rel (%p2696_p11) target bundleno = 192 (0xc0), region = 160 }
  0xbd   : > { %s1273_s3 = scalar_lea.vmem %s4386_s27, %s3950_s14 }
  0xbe   : > { %v1279_v0 = vld [vmem:[%s4387_s4] sm:$0xff]  ;;  %vm1280_vm0 = vcmask 261120  }
  0xbf   : > { %1281 = vst.msk [vmem:[#allocation2] sm:$0xff] %vm1280_vm0, %v1279_v0 }
  0xc0 PF: > { %vm1292_vm1 = vcmask 261120   ;;  %v3486_v3 = vmov 32.0   ;;  %v2800_v15 = vld [vmem:[%s3961_s1 + $0x8] sm:$0xff]  ;;  %v2799_v16 = vld [vmem:[%s3961_s1] sm:$0xff]  ;;  %s4388_s28 = scalar_lea.vmem [#allocation14], %s3907_s2  ;;  %vm1363_vm6 = vcmask 785408  }
  0xc1   : > { %2958 = vrcp.f32 %v3486_v3  ;;  %1356 = vmatpush.bf16.msra.mxu0 %v2800_v15  ;;  %v1291_v25 = vld [vmem:[%s3911_s26] sm:$0x3]  ;;  %v2951_v34 = vld [vmem:[%s4388_s28] ss:$0 sm:$0xff]  ;;  %s3487_s6 = smov 104   ;;  %s3488_s1 = smov 120  }
  0xc2   : > { %v1322_v27 = vperm.slane %v1291_v25, 0  ;;  %v1324_v30 = vperm.slane %v1291_v25, 1  ;;  %s3489_s26 = smov 96   ;;  %s3490_s10 = smov 72   ;;  %vm1370_vm7 = vcmask 64512   ;;  %vm1409_vm8 = vcmask 1043456  }
  0xc3   : > { %s3491_s19 = smov 88   ;;  %s3492_s25 = smov 112   ;;  %vm1492_vm9 = vcmask 130112   ;;  %vm1559_vm10 = vcmask 195712   ;;  %vm1626_vm11 = vcmask 261312   ;;  %vm1771_vm12 = vcmask 523264  }
  0xc4   : > { %s3493_s29 = smov 80   ;;  %s4389_s12 = scalar_lea.vmem [#allocation11], %s3892_s11  ;;  %vm1773_vm13 = vcmask 519168  }
  0xc5   : > { %1357 = vmatpush.bf16.msra.mxu0 %v2799_v16  ;;  %v1285_v51 = vld [vmem:[%s4389_s12] sm:$0xff]  ;;  %s3494_s20 = smov 64   ;;  %s3495_s18 = smov 56  }
  0xc6   : > { %v4002_v1 = vld [vmem:[#allocation2] sm:$0xff]  ;;  %v2697_v52 = vadd.f32 -1.0, %v1285_v51  ;;  %s3496_s16 = smov 40   ;;  %s3497_s15 = smov 48  }
  0xc7   : > { %v1293_v2 = vsel %vm1292_vm1, %v4002_v1, 0.0  ;;  %v2959_v4 = vpop.eup %2958  ;;  %s3498_s17 = smov 8   ;;  %s3499_s5 = smov 24  }
  0xc8   : > { %1294 = vadd.xlane.f32.xlu0 %v1293_v2  ;;  %v1297_v5 = vmul.f32 32.0, %v2959_v4  ;;  %vm1301_vm2 = vweird.f32 %v2959_v4  ;;  %v1287_v53 = vmul.f32 1e+09, %v2697_v52  ;;  %s3500_s27 = smov 16   ;;  %s4395_s4 = sld [smem:[#allocation53_spill]] }
  0xc9   : > { %s4396_s28 = scalar_lea.vmem [#allocation23], %s3907_s2 }
  0xca   : > { %v1298_v6 = vsub.f32 1.0, %v1297_v5 }
  0xcc   : > { %v1299_v7 = vmul.f32 %v2959_v4, %v1298_v6 }
  0xce   : > { %v1300_v8 = vadd.f32 %v2959_v4, %v1299_v7 }
  0xd0   : > { %v4006_v9 = vsel %vm1301_vm2, %v2959_v4, %v1300_v8  ;;  %vm1804_vm2 = vcmask 97280  }
 0x13b   : > { %v1295_v10 = vpop.xlane.xlu0 %1294 }
 0x13c   : > { %v1303_v11 = vmul.f32 %v4006_v9, %v1295_v10 }
 0x13e   : > { %v1304_v12 = vsub.f32 %v4002_v1, %v1303_v11 }
 0x140   : > { %v1305_v13 = vmul.f32 %v1304_v12, %v1304_v12 }
 0x142   : > { %v1306_v14 = vsel %vm1292_vm1, %v1305_v13, 0.0 }
 0x143   : > { %1307 = vadd.xlane.f32.xlu0 %v1306_v14 }
 0x1b6   : > { %v1308_v17 = vpop.xlane.xlu0 %1307 }
 0x1b7   : > { %v1309_v18 = vmul.f32 %v1308_v17, %v4006_v9 }
 0x1b9   : > { %v1310_v19 = vadd.f32 1e-06, %v1309_v18 }
 0x1bb   : > { %2960 = vrsqrt.f32 %v1310_v19  ;;  %vm1317_vm4 = vweird.f32 %v1310_v19 }
 0x1c1   : > { %v2961_v20 = vpop.eup %2960 }
 0x1c2   : > { %v1312_v21 = vmul.f32 %v2961_v20, %v1310_v19  ;;  %vm1318_vm3 = vweird.f32 %v2961_v20 }
 0x1c3   : > { %vm1319_vm5 = vmor %vm1317_vm4, %vm1318_vm3  ;;  %vm1823_vm3 = vcmask 1045504  }
 0x1c4   : > { %v1313_v22 = vmul.f32 %v2961_v20, %v1312_v21 }
 0x1c6   : > { %v1314_v23 = vmul.f32 0.5, %v1313_v22 }
 0x1c8   : > { %v1315_v24 = vsub.f32 1.5, %v1314_v23 }
 0x1ca   : > { %v1316_v26 = vmul.f32 %v2961_v20, %v1315_v24 }
 0x1cc   : > { %v1320_v28 = vsel %vm1319_vm5, %v2961_v20, %v1316_v26 }
 0x1cd   : > { %v1321_v29 = vmul.f32 %v1320_v28, %v1304_v12 }
 0x1cf   : > { %v1323_v31 = vmul.f32 %v1322_v27, %v1321_v29 }
 0x1d1   : > { %v1325_v32 = vadd.f32 %v1324_v30, %v1323_v31 }
 0x1d3   : > { %v1326_v33 = vpack.c.bf16 %v1325_v32, %v1325_v32 }
 0x1d5   : > { %2707 = vmatmul.msk.bf16.vlgmr.msra.gmra.mxu0 %vm1292_vm1, %v1326_v33 }
 0x252   : > { %v1359_v35 = vpop.f32.mrf.mxu0 }
 0x253   : > { %v1360_v36 = vadd.f32 %v2951_v34, %v1359_v35 }
 0x255   : > { %1364 = vst.msk [vmem:[#allocation3] sm:$0xff] %vm1363_vm6, %v1360_v36 }
 0x25a   : > { %v1361_v37 = vpop.f32.mrf.mxu0 }
 0x25c   : > { %v1561_v38 = vld [vmem:[#allocation3] sm:$0xff] }
 0x25d   : > { %v4018_v39 = vpack.c.bf16 %v1561_v38, %v1561_v38 }
 0x25f   : > { %1564 = vrot.lane.b32.xlu0 %v4018_v39, %s3487_s6  ;;  %1430 = vrot.lane.b32.xlu2 %v4018_v39, %s3488_s1 }
 0x260   : > { %1368 = vrot.lane.b32.xlu1 %v4018_v39, %s3489_s26 }
 0x267   : > { %1566 = vrot.lane.b32.xlu2 %v4018_v39, %s3490_s10 }
 0x268   : > { %1432 = vrot.lane.b32.xlu1 %v4018_v39, %s3491_s19 }
 0x26f   : > { %1497 = vrot.lane.b32.xlu2 %v4018_v39, %s3492_s25 }
 0x270   : > { %1499 = vrot.lane.b32.xlu1 %v4018_v39, %s3493_s29 }
 0x2b9   : > { %v1431_v40 = vpop.permute.xlu2 %1430 }
 0x2c1   : > { %v1567_v43 = vpop.permute.xlu2 %1566 }
 0x2c2   : > { %v1572_v46 = vsel %vm1370_vm7, %v1567_v43, 0 }
 0x2c9   : > { %v1498_v49 = vpop.permute.xlu2 %1497 }
 0x2d1   : > { %v1565_v50 = vpop.permute.xlu0 %1564 }
 0x2d2   : > { %v1369_v41 = vpop.permute.xlu1 %1368 }
 0x2d3   : > { %v1375_v42 = vsel %vm1370_vm7, %v1369_v41, 0 }
 0x2d4   : > { %1384 = vmatpush.bf16.xpose.msra.mxu1 %v1375_v42 }
 0x2da   : > { %v1433_v44 = vpop.permute.xlu1 %1432 }
 0x2db   : > { %2708 = vmatmul.msk.bf16.vlgmr.msra.gmra.mxu1 %vm1370_vm7, %v4018_v39  ;;  %v1438_v45 = vsel %vm1370_vm7, %v1433_v44, 0 }
 0x2dc   : > { %1447 = vmatpush.bf16.xpose.msra.mxu3 %v1438_v45 }
 0x2e2   : > { %v1500_v47 = vpop.permute.xlu1 %1499 }
 0x2e3   : > { %2710 = vmatmul.msk.bf16.vlgmr.msra.gmra.mxu3 %vm1370_vm7, %v1431_v40  ;;  %v1505_v48 = vsel %vm1370_vm7, %v1500_v47, 0 }
 0x2e4   : > { %1581 = vmatpush.bf16.xpose.msrb.mxu3 %v1572_v46  ;;  %1514 = vmatpush.bf16.xpose.msrb.mxu0 %v1505_v48 }
 0x2eb   : > { %2712 = vmatmul.msk.bf16.vlgmr.msrb.gmra.mxu0 %vm1370_vm7, %v1498_v49 }
 0x2f3   : > { %2714 = vmatmul.msk.bf16.vlgmr.msrb.gmra.mxu3 %vm1370_vm7, %v1565_v50 }
 0x358   : > { %v1386_v54 = vpop.f32.mrf.mxu1 }
 0x359   : > { %v1390_v55 = vmul.f32 0.35355338, %v1386_v54 }
 0x35b   : > { %v1391_v56 = vadd.f32 %v1390_v55, %v1287_v53 }
 0x35d   : > { %v1392_v57 = vsel %vm1370_vm7, %v1391_v56, -inf }
 0x35e   : > { %1393 = vmax.xlane.f32.xlu1 %v1392_v57 }
 0x360   : > { %v1388_v58 = vpop.f32.mrf.mxu1 }
 0x366   : > { %v1449_v59 = vpop.f32.mrf.mxu3 }
 0x367   : > { %v1453_v60 = vmul.f32 0.35355338, %v1449_v59 }
 0x368   : > { %v1516_v61 = vpop.f32.mrf.mxu0 }
 0x369   : > { %v1454_v62 = vadd.f32 %v1453_v60, %v1287_v53  ;;  %v1520_v63 = vmul.f32 0.35355338, %v1516_v61 }
 0x36b   : > { %v1455_v0 = vsel %vm1370_vm7, %v1454_v62, -inf  ;;  %v1521_v3 = vadd.f32 %v1520_v63, %v1287_v53 }
 0x36c   : > { %1456 = vmax.xlane.f32.xlu2 %v1455_v0  ;;  %v2802_v0 = vld [vmem:[%s3966_s13 + $0x8] sm:$0xff] }
 0x36d   : > { %v1522_v5 = vsel %vm1370_vm7, %v1521_v3, -inf  ;;  %1655 = vmatpush.bf16.msra.mxu0 %v2802_v0 }
 0x36e   : > { %v1451_v2 = vpop.f32.mrf.mxu3 }
 0x36f   : > { %v2801_v2 = vld [vmem:[%s3966_s13] sm:$0xff]  ;;  %s4390_s13 = scalar_lea.vmem [#allocation15], %s3907_s2 }
 0x370   : > { %v1518_v4 = vpop.f32.mrf.mxu0 }
 0x371   : > { %1656 = vmatpush.bf16.msra.mxu0 %v2801_v2 }
 0x374   : > { %1523 = vmax.xlane.f32.xlu2 %v1522_v5 }
 0x376   : > { %v1583_v6 = vpop.f32.mrf.mxu3 }
 0x377   : > { %v1587_v7 = vmul.f32 0.35355338, %v1583_v6 }
 0x379   : > { %v1588_v8 = vadd.f32 %v1587_v7, %v1287_v53 }
 0x37b   : > { %v1589_v10 = vsel %vm1370_vm7, %v1588_v8, -inf }
 0x37c   : > { %1590 = vmax.xlane.f32.xlu0 %v1589_v10 }
 0x37e   : > { %v1585_v11 = vpop.f32.mrf.mxu3 }
 0x38c   : > { %1404 = vrot.lane.b32.xlu2 %v4018_v39, %s3494_s20 }
 0x390   : > { %1467 = vrot.lane.b32.xlu0 %v4018_v39, %s3495_s18 }
 0x394   : > { %1601 = vrot.lane.b32.xlu2 %v4018_v39, %s3496_s16 }
 0x398   : > { %1534 = vrot.lane.b32.xlu0 %v4018_v39, %s3497_s15 }
 0x3d1   : > { %v1394_v12 = vpop.xlane.xlu1 %1393 }
 0x3d2   : > { %v1395_v13 = vsub.f32 %v1391_v56, %v1394_v12 }
 0x3d4   : > { %v1396_v14 = vmul.f32 1.442695, %v1395_v13 }
 0x3d6   : > { %2962 = vpow2.f32 %v1396_v14 }
 0x3dc   : > { %v2963_v15 = vpop.eup %2962 }
 0x3dd   : > { %v1398_v16 = vsel %vm1370_vm7, %v2963_v15, 0.0 }
 0x3de   : > { %1399 = vadd.xlane.f32.xlu1 %v1398_v16  ;;  %v2805_v16 = vld [vmem:[%s3976_s8] sm:$0xff] }
 0x3df   : > { %v1457_v17 = vpop.xlane.xlu2 %1456 }
 0x3e0   : > { %v1458_v18 = vsub.f32 %v1454_v62, %v1457_v17  ;;  %v1283_v17 = vld [vmem:[%s3955_s0] sm:$0xff] }
 0x3e2   : > { %v1459_v19 = vmul.f32 1.442695, %v1458_v18  ;;  %v1284_v18 = vld [vmem:[%s3955_s0 + $0x8] sm:$0xf]  ;;  %s4393_s0 = scalar_lea.vmem [#allocation9], %s3889_s22 }
 0x3e4   : > { %2964 = vpow2.f32 %v1459_v19  ;;  %v1733_v19 = vpack.c.bf16 %v1284_v18, %v1283_v17 }
 0x3e7   : > { %v1524_v20 = vpop.xlane.xlu2 %1523 }
 0x3e8   : > { %v1525_v27 = vsub.f32 %v1521_v3, %v1524_v20 }
 0x3ea   : > { %v2965_v21 = vpop.eup %2964  ;;  %v1526_v29 = vmul.f32 1.442695, %v1525_v27 }
 0x3eb   : > { %v1461_v22 = vsel %vm1370_vm7, %v2965_v21, 0.0 }
 0x3ec   : > { %1462 = vadd.xlane.f32.xlu1 %v1461_v22 }
 0x3ef   : > { %v1591_v23 = vpop.xlane.xlu0 %1590  ;;  %v1405_v24 = vpop.permute.xlu2 %1404 }
 0x3f0   : > { %v1592_v25 = vsub.f32 %v1588_v8, %v1591_v23  ;;  %v1411_v26 = vsel %vm1409_vm8, %v1405_v24, 0  ;;  %v2952_v8 = vld [vmem:[%s4390_s13] ss:$0 sm:$0xff]  ;;  %v2804_v24 = vld [vmem:[%s3971_s21 + $0x8] sm:$0xff] }
 0x3f1   : > { %1420 = vmatpush.bf16.msra.mxu2 %v1411_v26 }
 0x3f2   : > { %v1593_v28 = vmul.f32 1.442695, %v1592_v25  ;;  %v2803_v25 = vld [vmem:[%s3971_s21] sm:$0xff]  ;;  %s4394_s21 = sld [smem:[#allocation52_spill]] }
 0x3f4   : > { %2966 = vpow2.f32 %v1593_v28 }
 0x3f5   : > { %2968 = vpow2.f32 %v1526_v29 }
 0x3f7   : > { %v1602_v41 = vpop.permute.xlu2 %1601 }
 0x3f8   : > { %v1607_v43 = vsel %vm1409_vm8, %v1602_v41, 0  ;;  %v1668_v41 = vld [vmem:[%s3923_s7] sm:$0x3]  ;;  %s4392_s7 = scalar_lea.vmem [#allocation18], %s3907_s2 }
 0x3fa   : > { %v2967_v30 = vpop.eup %2966 }
 0x3fb   : > { %v1595_v31 = vsel %vm1370_vm7, %v2967_v30, 0.0  ;;  %v2969_v32 = vpop.eup %2968 }
 0x3fc   : > { %1596 = vadd.xlane.f32.xlu1 %v1595_v31  ;;  %v1528_v35 = vsel %vm1370_vm7, %v2969_v32, 0.0 }
 0x402   : > { %v1468_v33 = vpop.permute.xlu0 %1467 }
 0x403   : > { %v1473_v34 = vsel %vm1409_vm8, %v1468_v33, 0 }
 0x404   : > { %1482 = vmatpush.bf16.msrb.mxu2 %v1473_v34  ;;  %1529 = vadd.xlane.f32.xlu1 %v1528_v35 }
 0x40a   : > { %v1535_v36 = vpop.permute.xlu0 %1534 }
 0x40b   : > { %v1540_v37 = vsel %vm1409_vm8, %v1535_v36, 0 }
 0x40c   : > { %1549 = vmatpush.bf16.msrb.mxu1 %v1540_v37 }
 0x410   : > { %1725 = vmatpush.bf16.msra.mxu1 %v2804_v24 }
 0x414   : > { %1726 = vmatpush.bf16.msra.mxu1 %v2803_v25 }
 0x451   : > { %v1400_v38 = vpop.xlane.xlu1 %1399 }
 0x452   : > { %2970 = vrcp.f32 %v1400_v38 }
 0x458   : > { %v2971_v39 = vpop.eup %2970 }
 0x459   : > { %v1402_v40 = vmul.f32 %v2971_v39, %v2963_v15  ;;  %v2806_v15 = vld [vmem:[%s3976_s8 + $0x8] sm:$0xff]  ;;  %s4391_s8 = scalar_lea.vmem [#allocation20], %s3907_s2 }
 0x45a   : > { %1763 = vmatpush.bf16.msra.mxu3 %v2806_v15  ;;  %v2953_v26 = vld [vmem:[%s4391_s8] ss:$0 sm:$0xff] }
 0x45b   : > { %v1403_v42 = vpack.c.bf16 %v1402_v40, %v1402_v40 }
 0x45d   : > { %2709 = vmatmul.msk.bf16.vlgmr.msra.gmra.mxu2 %vm1370_vm7, %v1403_v42 }
 0x45e   : > { %1616 = vmatpush.bf16.msra.mxu2 %v1607_v43  ;;  %1764 = vmatpush.bf16.msra.mxu3 %v2805_v16 }
 0x45f   : > { %v1463_v44 = vpop.xlane.xlu1 %1462 }
 0x460   : > { %2972 = vrcp.f32 %v1463_v44 }
 0x461   : > { %2742 = vmatmul.msk.bf16.vlgmr.msra.gmra.mxu3 %vm1292_vm1, %v1733_v19 }
 0x466   : > { %v2973_v45 = vpop.eup %2972 }
 0x467   : > { %v1465_v46 = vmul.f32 %v2973_v45, %v2965_v21 }
 0x469   : > { %v1466_v47 = vpack.c.bf16 %v1465_v46, %v1465_v46 }
 0x46d   : > { %2711 = vmatmul.msk.bf16.vlgmr.msrb.gmra.mxu2 %vm1370_vm7, %v1466_v47  ;;  %v1691_v47 = vperm.slane %v1668_v41, 0 }
 0x46f   : > { %v1597_v48 = vpop.xlane.xlu1 %1596 }
 0x470   : > { %2974 = vrcp.f32 %v1597_v48 }
 0x476   : > { %v2975_v49 = vpop.eup %2974 }
 0x477   : > { %v1599_v50 = vmul.f32 %v2975_v49, %v2967_v30  ;;  %v1530_v51 = vpop.xlane.xlu1 %1529 }
 0x478   : > { %2976 = vrcp.f32 %v1530_v51  ;;  %v1693_v51 = vperm.slane %v1668_v41, 1 }
 0x479   : > { %v1600_v52 = vpack.c.bf16 %v1599_v50, %v1599_v50 }
 0x47d   : > { %2715 = vmatmul.msk.bf16.vlgmr.msra.gmra.mxu2 %vm1370_vm7, %v1600_v52 }
 0x47e   : > { %v2977_v53 = vpop.eup %2976 }
 0x47f   : > { %v1532_v54 = vmul.f32 %v2977_v53, %v2969_v32 }
 0x481   : > { %v1533_v55 = vpack.c.bf16 %v1532_v54, %v1532_v54 }
 0x483   : > { %2713 = vmatmul.msk.bf16.vlgmr.msrb.gmra.mxu1 %vm1370_vm7, %v1533_v55 }
 0x4e0   : > { %v1422_v56 = vpop.f32.mrf.mxu2 }
 0x4e1   : > { %1426 = vst.msk [vmem:[#allocation5] sm:$0xff] %vm1370_vm7, %v1422_v56  ;;  %v2954_v56 = vld [vmem:[%s4392_s7] ss:$0 sm:$0xff] }
 0x4e4   : > { %v1766_v27 = vpop.f32.mrf.mxu3 }
 0x4e5   : > { %v1767_v30 = vadd.f32 %v2953_v26, %v1766_v27 }
 0x4e7   : > { %1772 = vst.msk [vmem:[#allocation4] sm:$0xff] %vm1771_vm12, %v1767_v30 }
 0x4e8   : > { %v1424_v57 = vpop.f32.mrf.mxu2 }
 0x4ec   : > { %v1768_v32 = vpop.f32.mrf.mxu3 }
 0x4ed   : > { %v1769_v33 = vadd.f32 %v2953_v26, %v1768_v32 }
 0x4ee   : > { %v1843_v37 = vld [vmem:[#allocation4] sm:$0xff] }
 0x4ef   : > { %1774 = vst.msk [vmem:[#allocation4 + $0x8] sm:$0xf] %vm1773_vm13, %v1769_v33 }
 0x4f0   : > { %v1484_v58 = vpop.f32.mrf.mxu2 }
 0x4f1   : > { %1489 = vrot.lane.b32.xlu1 %v1484_v58, %s3498_s17 }
 0x4f6   : > { %v1844_v39 = vld [vmem:[#allocation4 + $0x8] sm:$0xf] }
 0x4f7   : > { %v1778_v40 = vld [vmem:[#allocation4 + $0x8] sm:$0xf]  ;;  %v4097_v43 = vpack.c.bf16 %v1844_v39, %v1843_v37 }
 0x4f8   : > { %v1486_v59 = vpop.f32.mrf.mxu2  ;;  %v1779_v44 = vpack.c.bf16 %v1778_v40, %v1843_v37  ;;  %v1914_v48 = vld [vmem:[#allocation4 + $0x8] sm:$0xf] }
 0x4f9   : > { %1850 = vrot.lane.b32.xlu1 %v4097_v43, %s3488_s1  ;;  %v1915_v52 = vpack.c.bf16 %v1914_v48, %v1843_v37 }
 0x4fa   : > { %v1784_v46 = vsel %vm1370_vm7, %v1779_v44, 0 }
 0x4fb   : > { %1793 = vmatpush.bf16.xpose.msrb.mxu2 %v1784_v46 }
 0x500   : > { %v1551_v60 = vpop.f32.mrf.mxu1  ;;  %v1618_v61 = vpop.f32.mrf.mxu2 }
 0x501   : > { %1623 = vrot.lane.b32.xlu0 %v1618_v61, %s3499_s5  ;;  %1556 = vrot.lane.b32.xlu2 %v1551_v60, %s3500_s27 }
 0x502   : > { %1920 = vrot.lane.b32.xlu1 %v1915_v52, %s3492_s25 }
 0x508   : > { %v1553_v62 = vpop.f32.mrf.mxu1  ;;  %v1620_v63 = vpop.f32.mrf.mxu2 }
 0x55b   : > { %v1557_v4 = vpop.permute.xlu2 %1556 }
 0x563   : > { %v1490_v3 = vpop.permute.xlu1 %1489 }
 0x564   : > { %1493 = vst.msk [vmem:[#allocation5] sm:$0xff] %vm1492_vm9, %v1490_v3  ;;  %v1984_v3 = vld [vmem:[#allocation4 + $0x8] sm:$0xf] }
 0x565   : > { %1560 = vst.msk [vmem:[#allocation5] sm:$0xff] %vm1559_vm10, %v1557_v4  ;;  %v4112_v4 = vpack.c.bf16 %v1984_v3, %v1843_v37 }
 0x56b   : > { %v1851_v57 = vpop.permute.xlu1 %1850 }
 0x56c   : > { %v1856_v58 = vsel %vm1370_vm7, %v1851_v57, 0 }
 0x56d   : > { %1865 = vmatpush.bf16.xpose.msrb.mxu1 %v1856_v58 }
 0x573   : > { %v1624_v5 = vpop.permute.xlu0 %1623 }
 0x574   : > { %1627 = vst.msk [vmem:[#allocation5] sm:$0xff] %vm1626_vm11, %v1624_v5  ;;  %v1921_v61 = vpop.permute.xlu1 %1920 }
 0x575   : > { %v1926_v62 = vsel %vm1370_vm7, %v1921_v61, 0 }
 0x576   : > { %1935 = vmatpush.bf16.xpose.msra.mxu2 %v1926_v62 }
 0x57b   : > { %v1628_v6 = vld [vmem:[#allocation5] sm:$0xff] }
 0x57c   : > { %v1629_v7 = vpack.c.bf16 %v1628_v6, %v1628_v6 }
 0x57e   : > { %2724 = vmatmul.msk.bf16.vlgmr.msra.gmra.mxu0 %vm1292_vm1, %v1629_v7  ;;  %v1288_v7 = vld [vmem:[%s4393_s0] sm:$0x1] }
 0x5fb   : > { %v1658_v10 = vpop.f32.mrf.mxu0 }
 0x5fc   : > { %v1662_v11 = vadd.f32 %v1658_v10, %v4002_v1 }
 0x5fe   : > { %v4078_v12 = vadd.f32 %v2952_v8, %v1662_v11  ;;  %v2698_v11 = vadd.f32 -1.0, %v1288_v7 }
 0x600   : > { %v1669_v13 = vsel %vm1292_vm1, %v4078_v12, 0.0 }
 0x601   : > { %1670 = vadd.xlane.f32.xlu2 %v1669_v13  ;;  %v1290_v13 = vmul.f32 1e+09, %v2698_v11 }
 0x603   : > { %v1660_v14 = vpop.f32.mrf.mxu0  ;;  %v1801_v15 = vperm.slane %v1290_v13, 0 }
 0x674   : > { %v1671_v1 = vpop.xlane.xlu2 %1670 }
 0x675   : > { %v1672_v20 = vmul.f32 %v1671_v1, %v4006_v9 }
 0x677   : > { %v1673_v21 = vsub.f32 %v4078_v12, %v1672_v20 }
 0x679   : > { %v1674_v22 = vmul.f32 %v1673_v21, %v1673_v21 }
 0x67b   : > { %v1675_v23 = vsel %vm1292_vm1, %v1674_v22, 0.0 }
 0x67c   : > { %1676 = vadd.xlane.f32.xlu0 %v1675_v23 }
 0x6ef   : > { %v1677_v28 = vpop.xlane.xlu0 %1676 }
 0x6f0   : > { %v1678_v29 = vmul.f32 %v1677_v28, %v4006_v9 }
 0x6f2   : > { %v1679_v31 = vadd.f32 1e-06, %v1678_v29 }
 0x6f4   : > { %2978 = vrsqrt.f32 %v1679_v31  ;;  %vm1686_vm15 = vweird.f32 %v1679_v31 }
 0x6fa   : > { %v2979_v34 = vpop.eup %2978 }
 0x6fb   : > { %v1681_v35 = vmul.f32 %v2979_v34, %v1679_v31  ;;  %vm1687_vm14 = vweird.f32 %v2979_v34 }
 0x6fc   : > { %vm1688_vm0 = vmor %vm1686_vm15, %vm1687_vm14 }
 0x6fd   : > { %v1682_v36 = vmul.f32 %v2979_v34, %v1681_v35 }
 0x6ff   : > { %v1683_v38 = vmul.f32 0.5, %v1682_v36 }
 0x701   : > { %v1684_v42 = vsub.f32 1.5, %v1683_v38 }
 0x703   : > { %v1685_v45 = vmul.f32 %v2979_v34, %v1684_v42 }
 0x705   : > { %v1689_v49 = vsel %vm1688_vm0, %v2979_v34, %v1685_v45 }
 0x706   : > { %v1690_v50 = vmul.f32 %v1689_v49, %v1673_v21 }
 0x708   : > { %v1692_v53 = vmul.f32 %v1691_v47, %v1690_v50 }
 0x70a   : > { %v1694_v54 = vadd.f32 %v1693_v51, %v1692_v53 }
 0x70c   : > { %v1695_v55 = vpack.c.bf16 %v1694_v54, %v1694_v54 }
 0x70e   : > { %2733 = vmatmul.msk.bf16.vlgmr.msra.gmra.mxu1 %vm1292_vm1, %v1695_v55 }
 0x78b   : > { %v1728_v59 = vpop.f32.mrf.mxu1 }
 0x78c   : > { %v1729_v60 = vadd.f32 %v2954_v56, %v1728_v59 }
 0x78e   : > { %1732 = vst.msk [vmem:[#allocation3] sm:$0xff] %vm1292_vm1, %v1729_v60 }
 0x793   : > { %v1730_v63 = vpop.f32.mrf.mxu1 }
 0x795   : > { %v1911_v0 = vld [vmem:[#allocation3] sm:$0xff] }
 0x796   : > { %v1912_v2 = vpack.c.bf16 %v1911_v0, %v1911_v0 }
 0x798   : > { %1917 = vrot.lane.b32.xlu2 %v1912_v2, %s3492_s25  ;;  %1847 = vrot.lane.b32.xlu1 %v1912_v2, %s3488_s1 }
 0x799   : > { %2743 = vmatmul.msk.bf16.vlgmr.msrb.gmra.mxu2 %vm1370_vm7, %v1912_v2 }
 0x7a0   : > { %1990 = vrot.lane.b32.xlu1 %v4112_v4, %s3487_s6 }
 0x7a8   : > { %1987 = vrot.lane.b32.xlu1 %v1912_v2, %s3487_s6 }
 0x7f2   : > { %v1918_v5 = vpop.permute.xlu2 %1917 }
 0x7f3   : > { %2747 = vmatmul.msk.bf16.vlgmr.msra.gmra.mxu2 %vm1370_vm7, %v1918_v5 }
 0x80a   : > { %v1848_v6 = vpop.permute.xlu1 %1847 }
 0x80b   : > { %2745 = vmatmul.msk.bf16.vlgmr.msrb.gmra.mxu1 %vm1370_vm7, %v1848_v6 }
 0x812   : > { %v1991_v8 = vpop.permute.xlu1 %1990 }
 0x813   : > { %v1996_v10 = vsel %vm1370_vm7, %v1991_v8, 0 }
 0x814   : > { %2005 = vmatpush.bf16.xpose.msra.mxu1 %v1996_v10 }
 0x81a   : > { %v1988_v14 = vpop.permute.xlu1 %1987 }
 0x81b   : > { %2749 = vmatmul.msk.bf16.vlgmr.msra.gmra.mxu1 %vm1370_vm7, %v1988_v14 }
 0x81c   : > { %v1795_v16 = vpop.f32.mrf.mxu2 }
 0x81d   : > { %v1799_v17 = vmul.f32 0.35355338, %v1795_v16 }
 0x81f   : > { %v1803_v18 = vadd.f32 %v1801_v15, %v1799_v17 }
 0x821   : > { %v1805_v19 = vsel %vm1804_vm2, %v1803_v18, -inf }
 0x822   : > { %1806 = vmax.xlane.f32.xlu1 %v1805_v19 }
 0x824   : > { %v1797_v1 = vpop.f32.mrf.mxu2 }
 0x83b   : > { %1818 = vrot.lane.b32.xlu1 %v1779_v44, %s3489_s26 }
 0x843   : > { %1955 = vrot.lane.b32.xlu1 %v1915_v52, %s3493_s29 }
 0x876   : > { %v1937_v20 = vpop.f32.mrf.mxu2 }
 0x877   : > { %v1941_v25 = vmul.f32 0.35355338, %v1937_v20 }
 0x879   : > { %v1942_v28 = vadd.f32 %v1941_v25, %v1801_v15  ;;  %v2808_v25 = vld [vmem:[%s4394_s21 + $0x8] sm:$0xff] }
 0x87a   : > { %2078 = vmatpush.bf16.msrb.mxu2 %v2808_v25 }
 0x87b   : > { %v1943_v30 = vsel %vm1804_vm2, %v1942_v28, -inf }
 0x87e   : > { %v1939_v21 = vpop.f32.mrf.mxu2 }
 0x888   : > { %v1867_v22 = vpop.f32.mrf.mxu1 }
 0x889   : > { %v1871_v23 = vmul.f32 0.35355338, %v1867_v22 }
 0x88b   : > { %v1872_v24 = vadd.f32 %v1871_v23, %v1801_v15 }
 0x88d   : > { %v1873_v26 = vsel %vm1804_vm2, %v1872_v24, -inf }
 0x88e   : > { %1874 = vmax.xlane.f32.xlu0 %v1873_v26  ;;  %v2807_v26 = vld [vmem:[%s4394_s21] sm:$0xff] }
 0x88f   : > { %2079 = vmatpush.bf16.msrb.mxu2 %v2807_v26 }
 0x890   : > { %v1869_v27 = vpop.f32.mrf.mxu1 }
 0x895   : > { %v1807_v29 = vpop.xlane.xlu1 %1806 }
 0x896   : > { %v1808_v31 = vsub.f32 %v1803_v18, %v1807_v29  ;;  %1944 = vmax.xlane.f32.xlu0 %v1943_v30 }
 0x898   : > { %v1809_v32 = vmul.f32 1.442695, %v1808_v31  ;;  %v2007_v33 = vpop.f32.mrf.mxu1 }
 0x899   : > { %v2011_v34 = vmul.f32 0.35355338, %v2007_v33 }
 0x89a   : > { %2980 = vpow2.f32 %v1809_v32  ;;  %v2955_v32 = vld [vmem:[%s4396_s28] ss:$0 sm:$0xff] }
 0x89b   : > { %v2012_v35 = vadd.f32 %v2011_v34, %v1801_v15 }
 0x89d   : > { %v2013_v36 = vsel %vm1804_vm2, %v2012_v35, -inf }
 0x89e   : > { %2014 = vmax.xlane.f32.xlu0 %v2013_v36 }
 0x8a0   : > { %v2009_v37 = vpop.f32.mrf.mxu1  ;;  %v2981_v38 = vpop.eup %2980 }
 0x8a1   : > { %v1811_v39 = vsel %vm1804_vm2, %v2981_v38, 0.0 }
 0x8a6   : > { %1812 = vadd.xlane.f32.xlu0 %v1811_v39 }
 0x8ad   : > { %v1819_v40 = vpop.permute.xlu1 %1818 }
 0x8ae   : > { %v1825_v41 = vsel %vm1823_vm3, %v1819_v40, 0 }
 0x8af   : > { %1834 = vmatpush.bf16.msrb.mxu0 %v1825_v41 }
 0x8b5   : > { %v1956_v42 = vpop.permute.xlu1 %1955 }
 0x8b6   : > { %v1961_v44 = vsel %vm1823_vm3, %v1956_v42, 0 }
 0x8b7   : > { %1970 = vmatpush.bf16.msra.mxu0 %v1961_v44  ;;  %v2810_v44 = vld [vmem:[%s4395_s4 + $0x8] sm:$0xff] }
 0x8ba   : > { %1885 = vrot.lane.b32.xlu0 %v4097_v43, %s3491_s19 }
 0x901   : > { %v1875_v45 = vpop.xlane.xlu0 %1874 }
 0x902   : > { %v1876_v46 = vsub.f32 %v1872_v24, %v1875_v45  ;;  %v2809_v45 = vld [vmem:[%s4395_s4] sm:$0xff] }
 0x904   : > { %v1877_v47 = vmul.f32 1.442695, %v1876_v46 }
 0x906   : > { %2982 = vpow2.f32 %v1877_v47 }
 0x909   : > { %v1945_v48 = vpop.xlane.xlu0 %1944 }
 0x90a   : > { %v1946_v49 = vsub.f32 %v1942_v28, %v1945_v48  ;;  %v2813_v48 = vld [vmem:[%s3992_s24 + $0x10] sm:$0xff] }
 0x90c   : > { %v2983_v50 = vpop.eup %2982  ;;  %v1947_v51 = vmul.f32 1.442695, %v1946_v49 }
 0x90d   : > { %v1879_v52 = vsel %vm1804_vm2, %v2983_v50, 0.0 }
 0x90e   : > { %2984 = vpow2.f32 %v1947_v51  ;;  %1880 = vadd.xlane.f32.xlu2 %v1879_v52 }
 0x911   : > { %v2015_v53 = vpop.xlane.xlu0 %2014 }
 0x912   : > { %v2016_v54 = vsub.f32 %v2012_v35, %v2015_v53 }
 0x914   : > { %v2985_v55 = vpop.eup %2984  ;;  %v2017_v56 = vmul.f32 1.442695, %v2016_v54  ;;  %v2091_v54 = vld [vmem:[%s3986_s9] sm:$0x3] }
 0x915   : > { %v1949_v57 = vsel %vm1804_vm2, %v2985_v55, 0.0 }
 0x916   : > { %2986 = vpow2.f32 %v2017_v56  ;;  %1950 = vadd.xlane.f32.xlu2 %v1949_v57  ;;  %v2114_v57 = vperm.slane %v2091_v54, 0 }
 0x919   : > { %v1813_v43 = vpop.xlane.xlu0 %1812 }
 0x91a   : > { %2988 = vrcp.f32 %v1813_v43 }
 0x91c   : > { %v2987_v58 = vpop.eup %2986 }
 0x91d   : > { %v2019_v59 = vsel %vm1804_vm2, %v2987_v58, 0.0 }
 0x91e   : > { %2020 = vadd.xlane.f32.xlu0 %v2019_v59  ;;  %v2116_v59 = vperm.slane %v2091_v54, 1 }
 0x920   : > { %v2989_v60 = vpop.eup %2988 }
 0x921   : > { %v1815_v61 = vmul.f32 %v2989_v60, %v2981_v38 }
 0x923   : > { %v1816_v62 = vpack.c.bf16 %v1815_v61, %v1815_v61 }
 0x925   : > { %2744 = vmatmul.msk.bf16.vlgmr.msrb.gmra.mxu0 %vm1804_vm2, %v1816_v62 }
 0x926   : > { %2148 = vmatpush.bf16.msrb.mxu0 %v2810_v44 }
 0x92a   : > { %2149 = vmatpush.bf16.msrb.mxu0 %v2809_v45 }
 0x92c   : > { %v1886_v63 = vpop.permute.xlu0 %1885 }
 0x92d   : > { %v1891_v0 = vsel %vm1823_vm3, %v1886_v63, 0  ;;  %v2812_v63 = vld [vmem:[%s3992_s24 + $0x8] sm:$0xff] }
 0x92e   : > { %2025 = vrot.lane.b32.xlu2 %v4112_v4, %s3490_s10  ;;  %1900 = vmatpush.bf16.msrb.mxu3 %v1891_v0  ;;  %v2811_v0 = vld [vmem:[%s3992_s24] sm:$0xff] }
 0x981   : > { %v1881_v2 = vpop.xlane.xlu2 %1880 }
 0x982   : > { %2990 = vrcp.f32 %v1881_v2  ;;  %v2956_v2 = vld [vmem:[%s1265_s30] ss:$0 sm:$0xff] }
 0x988   : > { %v2991_v3 = vpop.eup %2990 }
 0x989   : > { %v1883_v5 = vmul.f32 %v2991_v3, %v2983_v50  ;;  %v1951_v6 = vpop.xlane.xlu2 %1950 }
 0x98a   : > { %2992 = vrcp.f32 %v1951_v6 }
 0x98b   : > { %v1884_v7 = vpack.c.bf16 %v1883_v5, %v1883_v5 }
 0x98d   : > { %2746 = vmatmul.msk.bf16.vlgmr.msrb.gmra.mxu3 %vm1804_vm2, %v1884_v7 }
 0x990   : > { %v2993_v8 = vpop.eup %2992 }
 0x991   : > { %v1953_v10 = vmul.f32 %v2993_v8, %v2985_v55  ;;  %v2026_v11 = vpop.permute.xlu2 %2025  ;;  %v2021_v13 = vpop.xlane.xlu0 %2020 }
 0x992   : > { %v2031_v14 = vsel %vm1823_vm3, %v2026_v11, 0  ;;  %2994 = vrcp.f32 %v2021_v13 }
 0x993   : > { %v1954_v15 = vpack.c.bf16 %v1953_v10, %v1953_v10  ;;  %2040 = vmatpush.bf16.msra.mxu3 %v2031_v14  ;;  %v2957_v10 = vld [vmem:[%s1273_s3] ss:$0 sm:$0xff] }
 0x995   : > { %2748 = vmatmul.msk.bf16.vlgmr.msra.gmra.mxu0 %vm1804_vm2, %v1954_v15 }
 0x998   : > { %v2995_v4 = vpop.eup %2994 }
 0x999   : > { %v2023_v16 = vmul.f32 %v2995_v4, %v2987_v58 }
 0x99b   : > { %v2024_v17 = vpack.c.bf16 %v2023_v16, %v2023_v16 }
 0x99d   : > { %2750 = vmatmul.msk.bf16.vlgmr.msra.gmra.mxu3 %vm1804_vm2, %v2024_v17 }
 0x9a2   : > { %v1836_v18 = vpop.f32.mrf.mxu0 }
 0x9a3   : > { %1840 = vst.msk [vmem:[#allocation5] sm:$0xff] %vm1370_vm7, %v1836_v18 }
 0x9aa   : > { %v1838_v19 = vpop.f32.mrf.mxu0 }
 0xa10   : > { %v1902_v1 = vpop.f32.mrf.mxu3 }
 0xa11   : > { %1907 = vrot.lane.b32.xlu1 %v1902_v1, %s3498_s17 }
 0xa12   : > { %v1972_v20 = vpop.f32.mrf.mxu0 }
 0xa18   : > { %v1904_v21 = vpop.f32.mrf.mxu3 }
 0xa19   : > { %1977 = vrot.lane.b32.xlu1 %v1972_v20, %s3500_s27 }
 0xa1a   : > { %v1974_v22 = vpop.f32.mrf.mxu0 }
 0xa20   : > { %v2042_v23 = vpop.f32.mrf.mxu3 }
 0xa21   : > { %2047 = vrot.lane.b32.xlu0 %v2042_v23, %s3499_s5 }
 0xa28   : > { %v2044_v24 = vpop.f32.mrf.mxu3 }
 0xa83   : > { %v1908_v27 = vpop.permute.xlu1 %1907 }
 0xa84   : > { %1910 = vst.msk [vmem:[#allocation5] sm:$0xff] %vm1492_vm9, %v1908_v27 }
 0xa8b   : > { %v1978_v28 = vpop.permute.xlu1 %1977 }
 0xa8c   : > { %1980 = vst.msk [vmem:[#allocation5] sm:$0xff] %vm1559_vm10, %v1978_v28 }
 0xa93   : > { %v2048_v29 = vpop.permute.xlu0 %2047 }
 0xa94   : > { %2050 = vst.msk [vmem:[#allocation5] sm:$0xff] %vm1626_vm11, %v2048_v29 }
 0xa9b   : > { %v2051_v30 = vld [vmem:[#allocation5] sm:$0xff] }
 0xa9c   : > { %v2052_v31 = vpack.c.bf16 %v2051_v30, %v2051_v30 }
 0xa9e   : > { %2759 = vmatmul.msk.bf16.vlgmr.msrb.gmra.mxu2 %vm1292_vm1, %v2052_v31 }
 0xb21   : > { %v2081_v33 = vpop.f32.mrf.mxu2 }
 0xb22   : > { %v2085_v34 = vadd.f32 %v2081_v33, %v4078_v12  ;;  %v2814_v12 = vld [vmem:[%s3992_s24 + $0x18] sm:$0xff]  ;;  %s4399_s24 = sld [smem:[#allocation40_spill]] }
 0xb23   : > { %2196 = vmatpush.bf16.msrb.mxu1 %v2814_v12 }
 0xb24   : > { %v2090_v35 = vadd.f32 %v2955_v32, %v2085_v34 }
 0xb26   : > { %v2092_v36 = vsel %vm1292_vm1, %v2090_v35, 0.0 }
 0xb27   : > { %2093 = vadd.xlane.f32.xlu2 %v2092_v36  ;;  %2197 = vmatpush.bf16.msrb.mxu1 %v2813_v48 }
 0xb28   : > { %p2786_p12 = scmp.ne.s32.totalorder %s4399_s24, 1 }
 0xb29   : > { %v2083_v37 = vpop.f32.mrf.mxu2  ;;  %s4400_s3 = sld [smem:[#allocation75_spill]] (!%p2786_p12) }
 0xb2b   : > { %2198 = vmatpush.bf16.msrb.mxu1 %v2812_v63 }
 0xb2f   : > { %2199 = vmatpush.bf16.msrb.mxu1 %v2811_v0 }
 0xb9a   : > { %v2094_v38 = vpop.xlane.xlu2 %2093 }
 0xb9b   : > { %v2095_v39 = vmul.f32 %v2094_v38, %v4006_v9 }
 0xb9d   : > { %v2096_v40 = vsub.f32 %v2090_v35, %v2095_v39 }
 0xb9f   : > { %v2097_v41 = vmul.f32 %v2096_v40, %v2096_v40 }
 0xba1   : > { %v2098_v42 = vsel %vm1292_vm1, %v2097_v41, 0.0 }
 0xba2   : > { %2099 = vadd.xlane.f32.xlu1 %v2098_v42 }
 0xc15   : > { %v2100_v46 = vpop.xlane.xlu1 %2099 }
 0xc16   : > { %v2101_v47 = vmul.f32 %v2100_v46, %v4006_v9 }
 0xc18   : > { %v2102_v49 = vadd.f32 1e-06, %v2101_v47 }
 0xc1a   : > { %2996 = vrsqrt.f32 %v2102_v49  ;;  %vm2109_vm5 = vweird.f32 %v2102_v49 }
 0xc20   : > { %v2997_v50 = vpop.eup %2996 }
 0xc21   : > { %v2104_v51 = vmul.f32 %v2997_v50, %v2102_v49  ;;  %vm2110_vm4 = vweird.f32 %v2997_v50 }
 0xc22   : > { %vm2111_vm6 = vmor %vm2109_vm5, %vm2110_vm4 }
 0xc23   : > { %v2105_v52 = vmul.f32 %v2997_v50, %v2104_v51 }
 0xc25   : > { %v2106_v53 = vmul.f32 0.5, %v2105_v52 }
 0xc27   : > { %v2107_v55 = vsub.f32 1.5, %v2106_v53 }
 0xc29   : > { %v2108_v56 = vmul.f32 %v2997_v50, %v2107_v55 }
 0xc2b   : > { %v2112_v43 = vsel %vm2111_vm6, %v2997_v50, %v2108_v56 }
 0xc2c   : > { %v2113_v58 = vmul.f32 %v2112_v43, %v2096_v40 }
 0xc2e   : > { %v2115_v60 = vmul.f32 %v2114_v57, %v2113_v58 }
 0xc30   : > { %v2117_v61 = vadd.f32 %v2116_v59, %v2115_v60 }
 0xc32   : > { %v2118_v62 = vpack.c.bf16 %v2117_v61, %v2117_v61 }
 0xc34   : > { %2768 = vmatmul.msk.bf16.vlgmr.msrb.gmra.mxu0 %vm1292_vm1, %v2118_v62 }
 0xcb1   : > { %v2151_v3 = vpop.f32.mrf.mxu0 }
 0xcb2   : > { %v2152_v5 = vadd.f32 %v2956_v2, %v2151_v3 }
 0xcb4   : > { %v2155_v6 = vmax.f32 %v2152_v5, 0.0 }
 0xcb6   : > { %v2156_v7 = vpack.c.bf16 %v2155_v6, %v2155_v6 }
 0xcb8   : > { %2785 = vmatmul.msk.bf16.vlgmr.msrb.gmra.mxu1 %vm1771_vm12, %v2156_v7 }
 0xcb9   : > { %v2153_v8 = vpop.f32.mrf.mxu0 }
 0xd35   : > { %v2201_v11 = vpop.f32.mrf.mxu1 }
 0xd36   : > { %v2205_v13 = vadd.f32 %v2201_v11, %v2090_v35 }
 0xd38   : > { %v2210_v14 = vadd.f32 %v2957_v10, %v2205_v13 }
 0xd39   : > { %2215 = sbr.rel (%p2786_p12) target bundleno = 3659 (0xe4b), region = 164 }
 0xd3a   : > { %2211 = vst.msk [vmem:[#allocation2] sm:$0xff] %vm1292_vm1, %v2210_v14 }
 0xd3d   : > { %v2203_v15 = vpop.f32.mrf.mxu1 }
 0xd3e   : > { %v2217_v4 = vsel %vm1292_vm1, %v2210_v14, 0.0  ;;  %v2216_v27 = vld [vmem:[%s4400_s3] sm:$0x3] }
 0xd3f   : > { %2218 = vadd.xlane.f32.xlu0 %v2217_v4  ;;  %v2239_v30 = vperm.slane %v2216_v27, 0 }
 0xdb2   : > { %v2219_v16 = vpop.xlane.xlu0 %2218 }
 0xdb3   : > { %v2220_v17 = vmul.f32 %v2219_v16, %v4006_v9 }
 0xdb5   : > { %v2221_v18 = vsub.f32 %v2210_v14, %v2220_v17 }
 0xdb7   : > { %v2222_v19 = vmul.f32 %v2221_v18, %v2221_v18 }
 0xdb9   : > { %v2223_v1 = vsel %vm1292_vm1, %v2222_v19, 0.0 }
 0xdba   : > { %2224 = vadd.xlane.f32.xlu0 %v2223_v1 }
 0xe2d   : > { %v2225_v20 = vpop.xlane.xlu0 %2224 }
 0xe2e   : > { %v2226_v21 = vmul.f32 %v2225_v20, %v4006_v9  ;;  %v2241_v9 = vperm.slane %v2216_v27, 1 }
 0xe30   : > { %v2227_v22 = vadd.f32 1e-06, %v2226_v21 }
 0xe32   : > { %2998 = vrsqrt.f32 %v2227_v22  ;;  %vm2234_vm8 = vweird.f32 %v2227_v22 }
 0xe38   : > { %v2999_v23 = vpop.eup %2998 }
 0xe39   : > { %v2229_v24 = vmul.f32 %v2999_v23, %v2227_v22  ;;  %vm2235_vm7 = vweird.f32 %v2999_v23 }
 0xe3a   : > { %vm2236_vm9 = vmor %vm2234_vm8, %vm2235_vm7 }
 0xe3b   : > { %v2230_v25 = vmul.f32 %v2999_v23, %v2229_v24 }
 0xe3d   : > { %v2231_v26 = vmul.f32 0.5, %v2230_v25 }
 0xe3f   : > { %v2232_v28 = vsub.f32 1.5, %v2231_v26 }
 0xe41   : > { %v2233_v29 = vmul.f32 %v2999_v23, %v2232_v28 }
 0xe43   : > { %v2237_v31 = vsel %vm2236_vm9, %v2999_v23, %v2233_v29 }
 0xe44   : > { %v2238_v32 = vmul.f32 %v2237_v31, %v2221_v18 }
 0xe46   : > { %v2240_v33 = vmul.f32 %v2239_v30, %v2238_v32 }
 0xe48   : > { %v2242_v34 = vadd.f32 %v2241_v9, %v2240_v33 }
 0xe4a   : > { %2243 = vst.msk [vmem:[%s1233_s23] sm:$0xff] %vm1292_vm1, %v2242_v34 }
 0xe4b PF: > { %s4401_s19 = sld [smem:[#allocation41_spill]]  ;;  %s2257_s15 = sshll.u32 %s1233_s23, 4  ;;  %s2258_s15 = int_to_ptr.vmem [resolvable:$true] %s2257_s15 }
 0xe4c   : > { %s4403_s18 = sld [smem:[#allocation76_spill]]  ;;  %s2245_s5 = scalar_lea.sflag [#allocation8], %s3889_s22 }
 0xe51   : > { %s2788_s29 = sshll.u32 %s4401_s19, 3 }
 0xe52   : > { %s2255_s16 = scalar_lea.hbm %s4403_s18, %s2788_s29  ;;  %s3356_s0 = scalar_lea.hbm %s4403_s18, 16 }
 0xe53   : > { %s2259_s17 = sshll.u32 %s2255_s16, 4  ;;  %s2260_s17 = int_to_ptr.hbm [resolvable:$true] %s2259_s17 }
 0xe54   : > { %s3350_s27 = sshra.s32 %s2260_s17, 4  ;;  %s3351_s27 = int_to_ptr.hbm [resolvable:$true] %s3350_s27 }
 0xe55   : > { %s3352_s13 = scalar_lea.hbm %s3351_s27, 8  ;;  %p3357_p8 = scmp.lt.s32.totalorder %s3351_s27, %s4403_s18 }
 0xe56   : > { %p3353_p13 = scmp.ne.s32.totalorder %s3351_s27, %s3352_s13  ;;  %p3358_p2 = scmp.lt.s32.totalorder %s3356_s0, %s3352_s13 }
 0xe58   : > { %p3354_p0 = pnand %p3353_p13, %p3738_p4  ;;  %p3359_p1 = por %p3358_p2, %p3357_p8 }
 0xe5a   : > { %p3355_p5 = pneg %p3354_p0 }
 0xe5c   : > { %p3360_p3 = pnand %p3359_p1, %p3355_p5 }
 0xe5e   : > { %3363 = shalt.err (!%p3360_p3)
}
 0xe5f   : > { %2839 = dma.vmem_to_hbm [thread:$0]  (%p3738_p4), %s2258_s15, 128, %s2260_s17, %s2245_s5  }
 0xe60 PF: > { %s4404_s22 = sld [smem:[#allocation44_spill]] }
 0xe61   : > { %s4405_s11 = sld [smem:[#allocation37_spill]] }
 0xe66   : > { %p2845_p6 = scmp.ge.s32.totalorder %s4404_s22, 2 }
 0xe67   : > { %s2271_s28 = sand.u32 1, %s4405_s11  }
 0xe68   : > { %p2842_p7 = pnand %p2845_p6, %p3745_p10  ;;  %s2272_s2 = scalar_lea.sflag [#allocation8], %s2271_s28 }
 0xe6a   : > { %p2843_p9 = pneg %p2842_p7 }
 0xe6c   : > { %3437 = dma.done.wait (%p2843_p9), %s2272_s2, 128  }
 0xe6d   : > { %3439 = vsyncadd (%p2843_p9), %s2272_s2, 4294967168  ;;  %s56_s6 = sadd.s32 1, %s4404_s22   ;;  %s4407_s3 = sld [smem:[#allocation35_spill]] }
 0xe6e   : > { %p53_p11 = scmp.ge.s32.totalorder %s56_s6, 6   ;;  %s4408_s28 = sld [smem:[#allocation36_spill]] }
 0xe6f   : > { %s4409_s29 = sld [smem:[#allocation47_spill]] }
 0xe70   : > { %s4410_s30 = sld [smem:[#allocation38_spill]] }
 0xe71   : > { %s4411_s4 = sld [smem:[#allocation39_spill]] }
 0xe72   : > { %s4412_s0 = sld [smem:[#allocation48_spill]]  ;;  %55 = sbr.rel (!%p53_p11) target bundleno = 45 (0x2d), region = 321 }
 0xe73   : > { %s4413_s23 = sld [smem:[#allocation42_spill]] }
 0xe74   : > { %s4414_s1 = sld [smem:[#allocation43_spill]] }
 0xe75   : > { %s4415_s5 = sld [smem:[#allocation45_spill]] }
 0xe76   : > { %s4416_s24 = sld [smem:[#allocation46_spill]] }
 0xe77   :  { %2278 = vsyncpa [#allocation7], 1 }
 0xe78   :  { %2280 = vsyncpa [#allocation7 + $0x1], 1 }
 0xe79   :  { %2281 = vsyncpa [#allocation10], 1 }
 0xe7a   :  { %2283 = vsyncpa [#allocation10 + $0x1], 1 }
 0xe7b   :  { %2284 = vsyncpa [#allocation13], 1 }
 0xe7c   :  { %2286 = vsyncpa [#allocation13 + $0x1], 1 }
 0xe7d   :  { %2287 = vsyncpa [#allocation16], 1 }
 0xe7e   :  { %2289 = vsyncpa [#allocation16 + $0x1], 1 }
 0xe7f   :  { %2290 = vsyncpa [#allocation19], 1 }
 0xe80   :  { %2292 = vsyncpa [#allocation19 + $0x1], 1 }
 0xe81   :  { %2293 = vsyncpa [#allocation22], 1 }
 0xe82   :  { %2295 = vsyncpa [#allocation22 + $0x1], 1 }
 0xe83   :  { %2296 = vsyncpa [#allocation25], 1 }
 0xe84   :  { %2298 = vsyncpa [#allocation25 + $0x1], 1 }
 0xe85   :  { %2299 = vsyncpa [#allocation8], 1 }
 0xe86   :  { %2301 = vsyncpa [#allocation8 + $0x1], 1 }

</bundles_post_ra>
